<compile_context>
chip_gen: v7x
topology: tpu7x:2x2x1
jax: 0.10.0
libtpu: 0.0.40
codegen_flags: <defaults>
</compile_context>

<pallas_src>
import jax
import jax.numpy as jnp
from jax import lax
from jax.experimental import pallas as pl
from jax.experimental.pallas import tpu as pltpu


def _round_up(x, m):
    return (x + m - 1) // m * m


# ------------------------------ fused kernel -------------------------------

def _make_smb_kernel(*, H, n_layers, TH, L_IN, L_OUT,
                     record_layers, target_layers, index, t_pad):
    """Fused SMB kernel for one (sample, row-tile) grid cell."""
    HALO = n_layers
    # output-row extent of layer i inside one tile (incl. recompute halo)
    E = [TH + 2 * (HALO - 1 - i) for i in range(n_layers)]
    n_rec = len(record_layers)
    n_tgt = len(target_layers)

    def kernel(*refs):
        x_ref, w0_ref, wr_ref, cwb_ref, cb_ref = refs[:5]
        out_ref = refs[5]
        fmap_refs = refs[6:6 + n_rec]
        sp_ref = refs[6 + n_rec] if n_tgt else None

        r = pl.program_id(1)
        r0 = r * TH

        # Lane-dense input window for this row tile: (TH + 2*HALO, L_IN).
        cur = x_ref[0, 0]

        # Hoisted row iota (built once per tile): global image row of
        # layer-0 output slab row j; layer i's rows are a static slice of it.
        base_rows = (lax.broadcasted_iota(jnp.int32, (E[0], 1), 0)
                     + (r0 - (HALO - 1)))

        counts = []              # per-target partial nonzero counts (1,1)
        cacc = None              # collect-conv accumulator (registers)
        for i in range(n_layers):
            Ei = E[i]

            # ---- 3x3 conv: 3 row-shifted (ky) MXU dots against block-banded
            #      weights (kx taps + channels folded into K); register acc.
            acc = None
            for ky in range(3):
                lhs = cur[ky:ky + Ei, :]
                rhs = w0_ref[ky] if i == 0 else wr_ref[i - 1, ky]
                d = jnp.dot(lhs, rhs, preferred_element_type=jnp.float32)
                acc = d if acc is None else acc + d
            y = jnp.maximum(acc, 0.0)

            # ---- zero rows that fall outside the image (conv H-padding);
            #      W-padding is already encoded in the banded weights.
            grow = base_rows[i:i + Ei]
            y = jnp.where((grow >= 0) & (grow < H), y, 0.0)

            # ---- rows belonging to this output tile
            co = HALO - 1 - i
            center = y[co:co + TH, :]

            # ---- fused 1x1 collect conv (block-diagonal weights), reg acc
            c = jnp.dot(center, cwb_ref[i],
                        preferred_element_type=jnp.float32)
            cacc = c if cacc is None else cacc + c

            l = index * 4 + i
            if l in record_layers:           # lane-dense feature-map writeback
                k = record_layers.index(l)
                fmap_refs[k][0] = center
            if l in target_layers:           # partial count, reduced in wrapper
                counts.append(jnp.sum((center != 0.0).astype(jnp.float32),
                                      keepdims=True))          # (1, 1)

            cur = y                           # next layer input (registers)

        # ---- finalize: bias row (tiled over x) + lane-dense padded output
        out_ref[0] = cacc + cb_ref[...]

        if n_tgt:
            sp_ref[0, 0] = jnp.zeros((t_pad, 128), jnp.float32)
            for t_idx, cnt in enumerate(counts):
                sp_ref[0, 0, t_idx:t_idx + 1, :] = jnp.broadcast_to(cnt,
                                                                    (1, 128))

    return kernel


# ------------------------------ SMB forward --------------------------------

def smb_forward(x_nhwc, body_weights, collect_w, collect_b, *,
                index=0, target_layer_index=(0,), n_layers=4, block_h=None):
    """Mirrors SMB.forward with masks=None, generate_mask=None."""
    assert n_layers >= 2
    N, H, W, C_in = x_nhwc.shape
    C_out = body_weights[0].shape[-1]
    HALO = n_layers

    # ---- row-tile size (prefer large tiles to amortize halo recompute) ----
    if block_h is None:
        block_h = H
        for th in (64, 56, 48, 40, 32, 24, 16, 8):
            if th <= H and H % th == 0:
                block_h = th
                break
    TH = int(block_h)
    assert H % TH == 0, "block_h must divide H"
    R = H // TH
    WIN = TH + 2 * HALO

    # ---- lane-dense flattened (W*C) layout -------------------------------
    L_IN = _round_up(W * C_in, 128)
    L_OUT = _round_up(W * C_out, 128)

    lo = index * 4
    targets = sorted(l for l in target_layer_index if lo <= l < lo + n_layers)
    record = sorted(set(targets) | {l - 1 for l in targets if l - 1 >= lo})
    n_rec, n_tgt = len(record), len(targets)
    T_PAD = 8

    # ---- pack input: pad H by the fused halo, flatten (W, C) into lanes,
    #      and pre-extract per-tile windows (VMEM use independent of H) -----
    xf = x_nhwc.astype(jnp.float32)
    xp = jnp.pad(xf, ((0, 0), (HALO, HALO), (0, 0), (0, 0)))
    xp = xp.reshape(N, H + 2 * HALO, W * C_in)
    xp = jnp.pad(xp, ((0, 0), (0, 0), (0, L_IN - W * C_in)))
    xw = jnp.stack([xp[:, t * TH:t * TH + WIN, :] for t in range(R)], axis=1)

    # ---- block-banded conv weights: per ky, (W*C_in, W*C_out) with the kx
    #      taps on the three diagonals (conv W-zero-padding comes for free) --
    idx = jnp.arange(W)
    bands = [(idx[:, None] == idx[None, :] + (kx - 1)).astype(jnp.float32)
             for kx in range(3)]

    def banded(w_hwio, lin, lout):
        ci, co = int(w_hwio.shape[2]), int(w_hwio.shape[3])
        per_ky = []
        for ky in range(3):
            m = sum(jnp.kron(bands[kx], w_hwio[ky, kx].astype(jnp.float32))
                    for kx in range(3))
            m = jnp.pad(m, ((0, lin - W * ci), (0, lout - W * co)))
            per_ky.append(m)
        return jnp.stack(per_ky, axis=0)                  # (3, lin, lout)

    w0b = banded(body_weights[0], L_IN, L_OUT)
    wrb = jnp.stack([banded(w, L_OUT, L_OUT) for w in body_weights[1:]],
                    axis=0)

    # ---- block-diagonal collect weights + bias row tiled over x -----------
    eye_w = jnp.eye(W, dtype=jnp.float32)
    cwb = jnp.stack([
        jnp.pad(jnp.kron(eye_w,
                         collect_w[i * C_out:(i + 1) * C_out, :]
                         .astype(jnp.float32)),
                ((0, L_OUT - W * C_out), (0, L_OUT - W * C_out)))
        for i in range(n_layers)], axis=0)
    cb_row = jnp.pad(jnp.tile(collect_b.astype(jnp.float32).reshape(-1), W),
                     (0, L_OUT - W * C_out)).reshape(1, L_OUT)

    kernel = _make_smb_kernel(H=H, n_layers=n_layers, TH=TH, L_IN=L_IN,
                              L_OUT=L_OUT, record_layers=record,
                              target_layers=targets, index=index, t_pad=T_PAD)

    out_shape = [jax.ShapeDtypeStruct((N, H, L_OUT), jnp.float32)]
    out_shape += [jax.ShapeDtypeStruct((N, H, L_OUT), jnp.float32)
                  for _ in record]
    if n_tgt:
        out_shape += [jax.ShapeDtypeStruct((N, R, T_PAD, 128), jnp.float32)]

    in_specs = [
        pl.BlockSpec((1, 1, WIN, L_IN), lambda n, r: (n, r, 0, 0)),
        pl.BlockSpec((3, L_IN, L_OUT), lambda n, r: (0, 0, 0)),
        pl.BlockSpec((n_layers - 1, 3, L_OUT, L_OUT),
                     lambda n, r: (0, 0, 0, 0)),
        pl.BlockSpec((n_layers, L_OUT, L_OUT), lambda n, r: (0, 0, 0)),
        pl.BlockSpec((1, L_OUT), lambda n, r: (0, 0)),
    ]
    tile_spec = pl.BlockSpec((1, TH, L_OUT), lambda n, r: (n, r, 0))
    out_specs = [tile_spec] + [tile_spec] * n_rec
    if n_tgt:
        out_specs += [pl.BlockSpec((1, 1, T_PAD, 128),
                                   lambda n, r: (n, r, 0, 0))]

    flops = 2 * N * H * W * (9 * C_in * C_out
                             + 9 * C_out * C_out * (n_layers - 1)
                             + n_layers * C_out * C_out)
    bytes_accessed = 4 * (int(xw.size) + (1 + n_rec) * N * H * L_OUT
                          + int(w0b.size) + int(wrb.size) + int(cwb.size))

    outs = pl.pallas_call(
        kernel,
        out_shape=out_shape,
        grid=(N, R),
        in_specs=in_specs,
        out_specs=out_specs,
        compiler_params=pltpu.CompilerParams(
            dimension_semantics=("parallel", "parallel"),
            vmem_limit_bytes=32 * 1024 * 1024),
        cost_estimate=pl.CostEstimate(flops=int(flops), transcendentals=0,
                                      bytes_accessed=int(bytes_accessed)),
    )(xw, w0b, wrb, cwb, cb_row)

    def unflatten(flat):                 # (N, H, L_OUT) -> (N, H, W, C_out)
        return flat[:, :, :W * C_out].reshape(N, H, W, C_out)

    out_final = unflatten(outs[0])
    rec_maps = {l: unflatten(outs[1 + k]) for k, l in enumerate(record)}

    agent_input_fmap, agent_output_fmap = {}, {}
    sparsity_layers = {}
    sparsity_percent = 0.0
    if n_tgt:
        sp_counts = outs[1 + n_rec]      # (N, R, T_PAD, 128) partial counts
        inv_total = 1.0 / float(H * W * C_out)
        for t_idx, l in enumerate(targets):
            i = l - lo
            agent_input_fmap[l] = x_nhwc if i == 0 else rec_maps[l - 1]
            agent_output_fmap[l] = rec_maps[l]
            cnt = jnp.sum(sp_counts[:, :, t_idx, 0], axis=1)       # (N,)
            sp = 1.0 - cnt * inv_total
            sparsity_layers[l] = sp
            sparsity_percent = sparsity_percent + sp / len(target_layer_index)

    # TODO(synk): masks / generate_mask (mask-gated path) not modeled -- those
    # attributes are None at construction time in the reference module.
    return (out_final, agent_input_fmap, agent_output_fmap,
            sparsity_percent, sparsity_layers)


# ------------------------------- reference ---------------------------------

def _ref_forward(x, body_w, cw, cb):
    fea = x
    outs = []
    for w in body_w:
        fea = lax.conv_general_dilated(
            fea, w, (1, 1), ((1, 1), (1, 1)),
            dimension_numbers=('NHWC', 'HWIO', 'NHWC'))
        fea = jnp.maximum(fea, 0.0)
        outs.append(fea)
    cat = jnp.concatenate(outs, -1)
    out = lax.conv_general_dilated(
        cat, cw.reshape(1, 1, *cw.shape), (1, 1), ((0, 0), (0, 0)),
        dimension_numbers=('NHWC', 'HWIO', 'NHWC')) + cb.reshape(1, 1, 1, -1)
    return out, outs


# --------------------------------- main -------------------------------------

if __name__ == "__main__":
    N, C_in, C_out, H, W = 2, 4, 8, 16, 16
    n_layers = 4

    key = jax.random.PRNGKey(0)
    k_x, *k_w = jax.random.split(key, 1 + n_layers + 2)

    # Deterministic synthetic parameters (HWIO weights, no bias on body convs).
    body_w = []
    cin = C_in
    for i in range(n_layers):
        body_w.append(0.1 * jax.random.normal(k_w[i], (3, 3, cin, C_out),
                                              jnp.float32))
        cin = C_out
    collect_w = 0.1 * jax.random.normal(k_w[n_layers],
                                        (C_out * n_layers, C_out), jnp.float32)
    collect_b = 0.1 * jax.random.normal(k_w[n_layers + 1], (C_out,),
                                        jnp.float32)

    # PyTorch-style NCHW input, transposed to NHWC for the kernel.
    x_nchw = jax.random.normal(k_x, (N, C_in, H, W), jnp.float32)
    x_nhwc = jnp.transpose(x_nchw, (0, 2, 3, 1))

    # Pure-XLA reference on the same NHWC/HWIO data.
    ref_out, ref_layer_outs = _ref_forward(x_nhwc, body_w, collect_w, collect_b)
    ref_sp0 = 1.0 - jnp.sum((ref_layer_outs[0] != 0.0).astype(jnp.float32),
                            axis=(1, 2, 3)) / (H * W * C_out)

    # Run both the default tile (single row tile) and a smaller tile that
    # exercises the in-kernel halo recomputation across two row tiles.
    for bh in (None, 8):
        out, in_fmap, out_fmap, sp_pct, sp_layers = smb_forward(
            x_nhwc, body_w, collect_w, collect_b,
            index=0, target_layer_index=(0,), n_layers=n_layers, block_h=bh)
        out = jax.block_until_ready(out)
        sp_pct = jax.block_until_ready(sp_pct)

        assert out.shape == (N, H, W, C_out)
        assert bool(jnp.allclose(out, ref_out, atol=1e-4, rtol=1e-4))
        assert 0 in in_fmap and 0 in out_fmap
        assert bool(jnp.allclose(in_fmap[0], x_nhwc))
        assert bool(jnp.allclose(out_fmap[0], ref_layer_outs[0],
                                 atol=1e-4, rtol=1e-4))
        assert bool(jnp.allclose(sp_layers[0], ref_sp0, atol=1e-5))
        assert bool(jnp.allclose(sp_pct, ref_sp0, atol=1e-5))

    print("KERNEL_OK")
</pallas_src>

<mosaic_0001>
module attributes {stable_mosaic.version = 11 : i64} {
  func.func @kernel(%arg0: i32, %arg1: i32, %arg2: memref<1x1x24x128xf32, #tpu.memory_space<vmem>>, %arg3: memref<3x128x128xf32, #tpu.memory_space<vmem>>, %arg4: memref<3x3x128x128xf32, #tpu.memory_space<vmem>>, %arg5: memref<4x128x128xf32, #tpu.memory_space<vmem>>, %arg6: memref<1x128xf32, #tpu.memory_space<vmem>>, %arg7: memref<1x16x128xf32, #tpu.memory_space<vmem>>, %arg8: memref<1x16x128xf32, #tpu.memory_space<vmem>>, %arg9: memref<1x1x8x128xf32, #tpu.memory_space<vmem>>) attributes {dimension_semantics = [#tpu.dimension_semantics<parallel>, #tpu.dimension_semantics<parallel>], iteration_bounds = array<i64: 2, 1>, scalar_prefetch = 0 : i64, scratch_operands = 0 : i64, tpu.core_type = #tpu.core_type<tc>, window_params = [{transform_indices = @transform_0, window_bounds = array<i64: 1, 1, 24, 128>}, {pipeline_mode = #tpu.pipeline_mode<synchronous>, transform_indices = @transform_1, window_bounds = array<i64: 3, 128, 128>}, {pipeline_mode = #tpu.pipeline_mode<synchronous>, transform_indices = @transform_2, window_bounds = array<i64: 3, 3, 128, 128>}, {pipeline_mode = #tpu.pipeline_mode<synchronous>, transform_indices = @transform_3, window_bounds = array<i64: 4, 128, 128>}, {pipeline_mode = #tpu.pipeline_mode<synchronous>, transform_indices = @transform_4, window_bounds = array<i64: 1, 128>}, {transform_indices = @transform_5, window_bounds = array<i64: 1, 16, 128>}, {transform_indices = @transform_6, window_bounds = array<i64: 1, 16, 128>}, {transform_indices = @transform_7, window_bounds = array<i64: 1, 1, 8, 128>}]} {
    %c16_i32 = arith.constant 16 : i32
    %0 = arith.muli %arg1, %c16_i32 : i32
    %c0 = arith.constant 0 : index
    %c0_0 = arith.constant 0 : index
    %c0_1 = arith.constant 0 : index
    %c0_2 = arith.constant 0 : index
    %1 = vector.load %arg2[%c0, %c0_0, %c0_1, %c0_2] : memref<1x1x24x128xf32, #tpu.memory_space<vmem>>, vector<1x1x24x128xf32>
    %2 = vector.shape_cast %1 : vector<1x1x24x128xf32> to vector<24x128xf32>
    %3 = tpu.iota {dimensions = array<i32: 0>} : vector<22x1xi32>
    %c3_i32 = arith.constant 3 : i32
    %4 = arith.subi %0, %c3_i32 : i32
    %5 = vector.broadcast %4 : i32 to vector<22x1xi32>
    %6 = arith.addi %3, %5 : vector<22x1xi32>
    %7 = vector.extract_strided_slice %2 {offsets = [0, 0], sizes = [22, 128], strides = [1, 1]} : vector<24x128xf32> to vector<22x128xf32>
    %c0_3 = arith.constant 0 : index
    %c0_4 = arith.constant 0 : index
    %c0_5 = arith.constant 0 : index
    %8 = vector.load %arg3[%c0_3, %c0_4, %c0_5] : memref<3x128x128xf32, #tpu.memory_space<vmem>>, vector<1x128x128xf32>
    %9 = vector.shape_cast %8 : vector<1x128x128xf32> to vector<128x128xf32>
    %cst = arith.constant dense<0.000000e+00> : vector<22x128xf32>
    %10 = tpu.matmul %7, %9, %cst {dimension_numbers = #tpu.dot_dimension_numbers<[1], [0], [0], [1], [0, 0, 1, 1], [], []>} : vector<22x128xf32>, vector<128x128xf32>, vector<22x128xf32> -> vector<22x128xf32>
    %11 = vector.extract_strided_slice %2 {offsets = [1, 0], sizes = [22, 128], strides = [1, 1]} : vector<24x128xf32> to vector<22x128xf32>
    %c1 = arith.constant 1 : index
    %c0_6 = arith.constant 0 : index
    %c0_7 = arith.constant 0 : index
    %12 = vector.load %arg3[%c1, %c0_6, %c0_7] : memref<3x128x128xf32, #tpu.memory_space<vmem>>, vector<1x128x128xf32>
    %13 = vector.shape_cast %12 : vector<1x128x128xf32> to vector<128x128xf32>
    %cst_8 = arith.constant dense<0.000000e+00> : vector<22x128xf32>
    %14 = tpu.matmul %11, %13, %cst_8 {dimension_numbers = #tpu.dot_dimension_numbers<[1], [0], [0], [1], [0, 0, 1, 1], [], []>} : vector<22x128xf32>, vector<128x128xf32>, vector<22x128xf32> -> vector<22x128xf32>
    %15 = arith.addf %10, %14 : vector<22x128xf32>
    %16 = vector.extract_strided_slice %2 {offsets = [2, 0], sizes = [22, 128], strides = [1, 1]} : vector<24x128xf32> to vector<22x128xf32>
    %c2 = arith.constant 2 : index
    %c0_9 = arith.constant 0 : index
    %c0_10 = arith.constant 0 : index
    %17 = vector.load %arg3[%c2, %c0_9, %c0_10] : memref<3x128x128xf32, #tpu.memory_space<vmem>>, vector<1x128x128xf32>
    %18 = vector.shape_cast %17 : vector<1x128x128xf32> to vector<128x128xf32>
    %cst_11 = arith.constant dense<0.000000e+00> : vector<22x128xf32>
    %19 = tpu.matmul %16, %18, %cst_11 {dimension_numbers = #tpu.dot_dimension_numbers<[1], [0], [0], [1], [0, 0, 1, 1], [], []>} : vector<22x128xf32>, vector<128x128xf32>, vector<22x128xf32> -> vector<22x128xf32>
    %20 = arith.addf %15, %19 : vector<22x128xf32>
    %cst_12 = arith.constant 0.000000e+00 : f32
    %21 = vector.broadcast %cst_12 : f32 to vector<22x128xf32>
    %22 = arith.maximumf %20, %21 : vector<22x128xf32>
    %c0_i32 = arith.constant 0 : i32
    %23 = vector.broadcast %c0_i32 : i32 to vector<22x1xi32>
    %24 = arith.cmpi sge, %6, %23 : vector<22x1xi32>
    %c16_i32_13 = arith.constant 16 : i32
    %25 = vector.broadcast %c16_i32_13 : i32 to vector<22x1xi32>
    %26 = arith.cmpi slt, %6, %25 : vector<22x1xi32>
    %27 = arith.andi %24, %26 : vector<22x1xi1>
    %cst_14 = arith.constant 0.000000e+00 : f32
    %28 = vector.shape_cast %27 : vector<22x1xi1> to vector<22x1xi1>
    %29 = vector.broadcast %28 : vector<22x1xi1> to vector<22x128xi1>
    %30 = vector.broadcast %cst_14 : f32 to vector<22x128xf32>
    %31 = arith.select %29, %22, %30 : vector<22x128xi1>, vector<22x128xf32>
    %32 = vector.extract_strided_slice %31 {offsets = [3, 0], sizes = [16, 128], strides = [1, 1]} : vector<22x128xf32> to vector<16x128xf32>
    %c0_15 = arith.constant 0 : index
    %c0_16 = arith.constant 0 : index
    %c0_17 = arith.constant 0 : index
    %33 = vector.load %arg5[%c0_15, %c0_16, %c0_17] : memref<4x128x128xf32, #tpu.memory_space<vmem>>, vector<1x128x128xf32>
    %34 = vector.shape_cast %33 : vector<1x128x128xf32> to vector<128x128xf32>
    %cst_18 = arith.constant dense<0.000000e+00> : vector<16x128xf32>
    %35 = tpu.matmul %32, %34, %cst_18 {dimension_numbers = #tpu.dot_dimension_numbers<[1], [0], [0], [1], [0, 0, 1, 1], [], []>} : vector<16x128xf32>, vector<128x128xf32>, vector<16x128xf32> -> vector<16x128xf32>
    %c0_19 = arith.constant 0 : index
    %c0_20 = arith.constant 0 : index
    %c0_21 = arith.constant 0 : index
    %36 = vector.load %arg8[%c0_19, %c0_20, %c0_21] : memref<1x16x128xf32, #tpu.memory_space<vmem>>, vector<1x16x128xf32>
    %37 = vector.shape_cast %36 : vector<1x16x128xf32> to vector<16x128xf32>
    %38 = vector.shape_cast %32 : vector<16x128xf32> to vector<1x16x128xf32>
    tpu.vector_store %arg8[%c0_19, %c0_20, %c0_21], %38 {strides = array<i32>} : memref<1x16x128xf32, #tpu.memory_space<vmem>>, vector<1x16x128xf32>,
    %cst_22 = arith.constant 0.000000e+00 : f32
    %39 = vector.broadcast %cst_22 : f32 to vector<16x128xf32>
    %40 = arith.cmpf one, %32, %39 : vector<16x128xf32>
    %41 = arith.extui %40 : vector<16x128xi1> to vector<16x128xi32>
    %42 = arith.sitofp %41 : vector<16x128xi32> to vector<16x128xf32>
    %43 = vector.shape_cast %42 : vector<16x128xf32> to vector<1x16x128xf32>
    %cst_23 = arith.constant dense<0.000000e+00> : vector<1xf32>
    %44 = vector.multi_reduction <add>, %43, %cst_23 [1, 2] : vector<1x16x128xf32> to vector<1xf32>
    %45 = vector.shape_cast %44 : vector<1xf32> to vector<1x1x1xf32>
    %46 = vector.extract %45[0, 0, 0] : f32 from vector<1x1x1xf32>
    %47 = vector.broadcast %46 : f32 to vector<1x1xf32>
    %48 = vector.extract_strided_slice %31 {offsets = [0, 0], sizes = [20, 128], strides = [1, 1]} : vector<22x128xf32> to vector<20x128xf32>
    %c0_24 = arith.constant 0 : index
    %c0_25 = arith.constant 0 : index
    %c0_26 = arith.constant 0 : index
    %c0_27 = arith.constant 0 : index
    %49 = vector.load %arg4[%c0_24, %c0_25, %c0_26, %c0_27] : memref<3x3x128x128xf32, #tpu.memory_space<vmem>>, vector<1x1x128x128xf32>
    %50 = vector.shape_cast %49 : vector<1x1x128x128xf32> to vector<128x128xf32>
    %cst_28 = arith.constant dense<0.000000e+00> : vector<20x128xf32>
    %51 = tpu.matmul %48, %50, %cst_28 {dimension_numbers = #tpu.dot_dimension_numbers<[1], [0], [0], [1], [0, 0, 1, 1], [], []>} : vector<20x128xf32>, vector<128x128xf32>, vector<20x128xf32> -> vector<20x128xf32>
    %52 = vector.extract_strided_slice %31 {offsets = [1, 0], sizes = [20, 128], strides = [1, 1]} : vector<22x128xf32> to vector<20x128xf32>
    %c0_29 = arith.constant 0 : index
    %c1_30 = arith.constant 1 : index
    %c0_31 = arith.constant 0 : index
    %c0_32 = arith.constant 0 : index
    %53 = vector.load %arg4[%c0_29, %c1_30, %c0_31, %c0_32] : memref<3x3x128x128xf32, #tpu.memory_space<vmem>>, vector<1x1x128x128xf32>
    %54 = vector.shape_cast %53 : vector<1x1x128x128xf32> to vector<128x128xf32>
    %cst_33 = arith.constant dense<0.000000e+00> : vector<20x128xf32>
    %55 = tpu.matmul %52, %54, %cst_33 {dimension_numbers = #tpu.dot_dimension_numbers<[1], [0], [0], [1], [0, 0, 1, 1], [], []>} : vector<20x128xf32>, vector<128x128xf32>, vector<20x128xf32> -> vector<20x128xf32>
    %56 = arith.addf %51, %55 : vector<20x128xf32>
    %57 = vector.extract_strided_slice %31 {offsets = [2, 0], sizes = [20, 128], strides = [1, 1]} : vector<22x128xf32> to vector<20x128xf32>
    %c0_34 = arith.constant 0 : index
    %c2_35 = arith.constant 2 : index
    %c0_36 = arith.constant 0 : index
    %c0_37 = arith.constant 0 : index
    %58 = vector.load %arg4[%c0_34, %c2_35, %c0_36, %c0_37] : memref<3x3x128x128xf32, #tpu.memory_space<vmem>>, vector<1x1x128x128xf32>
    %59 = vector.shape_cast %58 : vector<1x1x128x128xf32> to vector<128x128xf32>
    %cst_38 = arith.constant dense<0.000000e+00> : vector<20x128xf32>
    %60 = tpu.matmul %57, %59, %cst_38 {dimension_numbers = #tpu.dot_dimension_numbers<[1], [0], [0], [1], [0, 0, 1, 1], [], []>} : vector<20x128xf32>, vector<128x128xf32>, vector<20x128xf32> -> vector<20x128xf32>
    %61 = arith.addf %56, %60 : vector<20x128xf32>
    %cst_39 = arith.constant 0.000000e+00 : f32
    %62 = vector.broadcast %cst_39 : f32 to vector<20x128xf32>
    %63 = arith.maximumf %61, %62 : vector<20x128xf32>
    %64 = vector.extract_strided_slice %6 {offsets = [1, 0], sizes = [20, 1], strides = [1, 1]} : vector<22x1xi32> to vector<20x1xi32>
    %c0_i32_40 = arith.constant 0 : i32
    %65 = vector.broadcast %c0_i32_40 : i32 to vector<20x1xi32>
    %66 = arith.cmpi sge, %64, %65 : vector<20x1xi32>
    %c16_i32_41 = arith.constant 16 : i32
    %67 = vector.broadcast %c16_i32_41 : i32 to vector<20x1xi32>
    %68 = arith.cmpi slt, %64, %67 : vector<20x1xi32>
    %69 = arith.andi %66, %68 : vector<20x1xi1>
    %cst_42 = arith.constant 0.000000e+00 : f32
    %70 = vector.shape_cast %69 : vector<20x1xi1> to vector<20x1xi1>
    %71 = vector.broadcast %70 : vector<20x1xi1> to vector<20x128xi1>
    %72 = vector.broadcast %cst_42 : f32 to vector<20x128xf32>
    %73 = arith.select %71, %63, %72 : vector<20x128xi1>, vector<20x128xf32>
    %74 = vector.extract_strided_slice %73 {offsets = [2, 0], sizes = [16, 128], strides = [1, 1]} : vector<20x128xf32> to vector<16x128xf32>
    %c1_43 = arith.constant 1 : index
    %c0_44 = arith.constant 0 : index
    %c0_45 = arith.constant 0 : index
    %75 = vector.load %arg5[%c1_43, %c0_44, %c0_45] : memref<4x128x128xf32, #tpu.memory_space<vmem>>, vector<1x128x128xf32>
    %76 = vector.shape_cast %75 : vector<1x128x128xf32> to vector<128x128xf32>
    %cst_46 = arith.constant dense<0.000000e+00> : vector<16x128xf32>
    %77 = tpu.matmul %74, %76, %cst_46 {dimension_numbers = #tpu.dot_dimension_numbers<[1], [0], [0], [1], [0, 0, 1, 1], [], []>} : vector<16x128xf32>, vector<128x128xf32>, vector<16x128xf32> -> vector<16x128xf32>
    %78 = arith.addf %35, %77 : vector<16x128xf32>
    %79 = vector.extract_strided_slice %73 {offsets = [0, 0], sizes = [18, 128], strides = [1, 1]} : vector<20x128xf32> to vector<18x128xf32>
    %c1_47 = arith.constant 1 : index
    %c0_48 = arith.constant 0 : index
    %c0_49 = arith.constant 0 : index
    %c0_50 = arith.constant 0 : index
    %80 = vector.load %arg4[%c1_47, %c0_48, %c0_49, %c0_50] : memref<3x3x128x128xf32, #tpu.memory_space<vmem>>, vector<1x1x128x128xf32>
    %81 = vector.shape_cast %80 : vector<1x1x128x128xf32> to vector<128x128xf32>
    %cst_51 = arith.constant dense<0.000000e+00> : vector<18x128xf32>
    %82 = tpu.matmul %79, %81, %cst_51 {dimension_numbers = #tpu.dot_dimension_numbers<[1], [0], [0], [1], [0, 0, 1, 1], [], []>} : vector<18x128xf32>, vector<128x128xf32>, vector<18x128xf32> -> vector<18x128xf32>
    %83 = vector.extract_strided_slice %73 {offsets = [1, 0], sizes = [18, 128], strides = [1, 1]} : vector<20x128xf32> to vector<18x128xf32>
    %c1_52 = arith.constant 1 : index
    %c1_53 = arith.constant 1 : index
    %c0_54 = arith.constant 0 : index
    %c0_55 = arith.constant 0 : index
    %84 = vector.load %arg4[%c1_52, %c1_53, %c0_54, %c0_55] : memref<3x3x128x128xf32, #tpu.memory_space<vmem>>, vector<1x1x128x128xf32>
    %85 = vector.shape_cast %84 : vector<1x1x128x128xf32> to vector<128x128xf32>
    %cst_56 = arith.constant dense<0.000000e+00> : vector<18x128xf32>
    %86 = tpu.matmul %83, %85, %cst_56 {dimension_numbers = #tpu.dot_dimension_numbers<[1], [0], [0], [1], [0, 0, 1, 1], [], []>} : vector<18x128xf32>, vector<128x128xf32>, vector<18x128xf32> -> vector<18x128xf32>
    %87 = arith.addf %82, %86 : vector<18x128xf32>
    %88 = vector.extract_strided_slice %73 {offsets = [2, 0], sizes = [18, 128], strides = [1, 1]} : vector<20x128xf32> to vector<18x128xf32>
    %c1_57 = arith.constant 1 : index
    %c2_58 = arith.constant 2 : index
    %c0_59 = arith.constant 0 : index
    %c0_60 = arith.constant 0 : index
    %89 = vector.load %arg4[%c1_57, %c2_58, %c0_59, %c0_60] : memref<3x3x128x128xf32, #tpu.memory_space<vmem>>, vector<1x1x128x128xf32>
    %90 = vector.shape_cast %89 : vector<1x1x128x128xf32> to vector<128x128xf32>
    %cst_61 = arith.constant dense<0.000000e+00> : vector<18x128xf32>
    %91 = tpu.matmul %88, %90, %cst_61 {dimension_numbers = #tpu.dot_dimension_numbers<[1], [0], [0], [1], [0, 0, 1, 1], [], []>} : vector<18x128xf32>, vector<128x128xf32>, vector<18x128xf32> -> vector<18x128xf32>
    %92 = arith.addf %87, %91 : vector<18x128xf32>
    %cst_62 = arith.constant 0.000000e+00 : f32
    %93 = vector.broadcast %cst_62 : f32 to vector<18x128xf32>
    %94 = arith.maximumf %92, %93 : vector<18x128xf32>
    %95 = vector.extract_strided_slice %6 {offsets = [2, 0], sizes = [18, 1], strides = [1, 1]} : vector<22x1xi32> to vector<18x1xi32>
    %c0_i32_63 = arith.constant 0 : i32
    %96 = vector.broadcast %c0_i32_63 : i32 to vector<18x1xi32>
    %97 = arith.cmpi sge, %95, %96 : vector<18x1xi32>
    %c16_i32_64 = arith.constant 16 : i32
    %98 = vector.broadcast %c16_i32_64 : i32 to vector<18x1xi32>
    %99 = arith.cmpi slt, %95, %98 : vector<18x1xi32>
    %100 = arith.andi %97, %99 : vector<18x1xi1>
    %cst_65 = arith.constant 0.000000e+00 : f32
    %101 = vector.shape_cast %100 : vector<18x1xi1> to vector<18x1xi1>
    %102 = vector.broadcast %101 : vector<18x1xi1> to vector<18x128xi1>
    %103 = vector.broadcast %cst_65 : f32 to vector<18x128xf32>
    %104 = arith.select %102, %94, %103 : vector<18x128xi1>, vector<18x128xf32>
    %105 = vector.extract_strided_slice %104 {offsets = [1, 0], sizes = [16, 128], strides = [1, 1]} : vector<18x128xf32> to vector<16x128xf32>
    %c2_66 = arith.constant 2 : index
    %c0_67 = arith.constant 0 : index
    %c0_68 = arith.constant 0 : index
    %106 = vector.load %arg5[%c2_66, %c0_67, %c0_68] : memref<4x128x128xf32, #tpu.memory_space<vmem>>, vector<1x128x128xf32>
    %107 = vector.shape_cast %106 : vector<1x128x128xf32> to vector<128x128xf32>
    %cst_69 = arith.constant dense<0.000000e+00> : vector<16x128xf32>
    %108 = tpu.matmul %105, %107, %cst_69 {dimension_numbers = #tpu.dot_dimension_numbers<[1], [0], [0], [1], [0, 0, 1, 1], [], []>} : vector<16x128xf32>, vector<128x128xf32>, vector<16x128xf32> -> vector<16x128xf32>
    %109 = arith.addf %78, %108 : vector<16x128xf32>
    %110 = vector.extract_strided_slice %104 {offsets = [0, 0], sizes = [16, 128], strides = [1, 1]} : vector<18x128xf32> to vector<16x128xf32>
    %c2_70 = arith.constant 2 : index
    %c0_71 = arith.constant 0 : index
    %c0_72 = arith.constant 0 : index
    %c0_73 = arith.constant 0 : index
    %111 = vector.load %arg4[%c2_70, %c0_71, %c0_72, %c0_73] : memref<3x3x128x128xf32, #tpu.memory_space<vmem>>, vector<1x1x128x128xf32>
    %112 = vector.shape_cast %111 : vector<1x1x128x128xf32> to vector<128x128xf32>
    %cst_74 = arith.constant dense<0.000000e+00> : vector<16x128xf32>
    %113 = tpu.matmul %110, %112, %cst_74 {dimension_numbers = #tpu.dot_dimension_numbers<[1], [0], [0], [1], [0, 0, 1, 1], [], []>} : vector<16x128xf32>, vector<128x128xf32>, vector<16x128xf32> -> vector<16x128xf32>
    %114 = vector.extract_strided_slice %104 {offsets = [1, 0], sizes = [16, 128], strides = [1, 1]} : vector<18x128xf32> to vector<16x128xf32>
    %c2_75 = arith.constant 2 : index
    %c1_76 = arith.constant 1 : index
    %c0_77 = arith.constant 0 : index
    %c0_78 = arith.constant 0 : index
    %115 = vector.load %arg4[%c2_75, %c1_76, %c0_77, %c0_78] : memref<3x3x128x128xf32, #tpu.memory_space<vmem>>, vector<1x1x128x128xf32>
    %116 = vector.shape_cast %115 : vector<1x1x128x128xf32> to vector<128x128xf32>
    %cst_79 = arith.constant dense<0.000000e+00> : vector<16x128xf32>
    %117 = tpu.matmul %114, %116, %cst_79 {dimension_numbers = #tpu.dot_dimension_numbers<[1], [0], [0], [1], [0, 0, 1, 1], [], []>} : vector<16x128xf32>, vector<128x128xf32>, vector<16x128xf32> -> vector<16x128xf32>
    %118 = arith.addf %113, %117 : vector<16x128xf32>
    %119 = vector.extract_strided_slice %104 {offsets = [2, 0], sizes = [16, 128], strides = [1, 1]} : vector<18x128xf32> to vector<16x128xf32>
    %c2_80 = arith.constant 2 : index
    %c2_81 = arith.constant 2 : index
    %c0_82 = arith.constant 0 : index
    %c0_83 = arith.constant 0 : index
    %120 = vector.load %arg4[%c2_80, %c2_81, %c0_82, %c0_83] : memref<3x3x128x128xf32, #tpu.memory_space<vmem>>, vector<1x1x128x128xf32>
    %121 = vector.shape_cast %120 : vector<1x1x128x128xf32> to vector<128x128xf32>
    %cst_84 = arith.constant dense<0.000000e+00> : vector<16x128xf32>
    %122 = tpu.matmul %119, %121, %cst_84 {dimension_numbers = #tpu.dot_dimension_numbers<[1], [0], [0], [1], [0, 0, 1, 1], [], []>} : vector<16x128xf32>, vector<128x128xf32>, vector<16x128xf32> -> vector<16x128xf32>
    %123 = arith.addf %118, %122 : vector<16x128xf32>
    %cst_85 = arith.constant 0.000000e+00 : f32
    %124 = vector.broadcast %cst_85 : f32 to vector<16x128xf32>
    %125 = arith.maximumf %123, %124 : vector<16x128xf32>
    %126 = vector.extract_strided_slice %6 {offsets = [3, 0], sizes = [16, 1], strides = [1, 1]} : vector<22x1xi32> to vector<16x1xi32>
    %c0_i32_86 = arith.constant 0 : i32
    %127 = vector.broadcast %c0_i32_86 : i32 to vector<16x1xi32>
    %128 = arith.cmpi sge, %126, %127 : vector<16x1xi32>
    %c16_i32_87 = arith.constant 16 : i32
    %129 = vector.broadcast %c16_i32_87 : i32 to vector<16x1xi32>
    %130 = arith.cmpi slt, %126, %129 : vector<16x1xi32>
    %131 = arith.andi %128, %130 : vector<16x1xi1>
    %cst_88 = arith.constant 0.000000e+00 : f32
    %132 = vector.shape_cast %131 : vector<16x1xi1> to vector<16x1xi1>
    %133 = vector.broadcast %132 : vector<16x1xi1> to vector<16x128xi1>
    %134 = vector.broadcast %cst_88 : f32 to vector<16x128xf32>
    %135 = arith.select %133, %125, %134 : vector<16x128xi1>, vector<16x128xf32>
    %c3 = arith.constant 3 : index
    %c0_89 = arith.constant 0 : index
    %c0_90 = arith.constant 0 : index
    %136 = vector.load %arg5[%c3, %c0_89, %c0_90] : memref<4x128x128xf32, #tpu.memory_space<vmem>>, vector<1x128x128xf32>
    %137 = vector.shape_cast %136 : vector<1x128x128xf32> to vector<128x128xf32>
    %cst_91 = arith.constant dense<0.000000e+00> : vector<16x128xf32>
    %138 = tpu.matmul %135, %137, %cst_91 {dimension_numbers = #tpu.dot_dimension_numbers<[1], [0], [0], [1], [0, 0, 1, 1], [], []>} : vector<16x128xf32>, vector<128x128xf32>, vector<16x128xf32> -> vector<16x128xf32>
    %139 = arith.addf %109, %138 : vector<16x128xf32>
    %c0_92 = arith.constant 0 : index
    %c0_93 = arith.constant 0 : index
    %140 = vector.load %arg6[%c0_92, %c0_93] : memref<1x128xf32, #tpu.memory_space<vmem>>, vector<1x128xf32>
    %141 = vector.broadcast %140 : vector<1x128xf32> to vector<16x128xf32>
    %142 = arith.addf %139, %141 : vector<16x128xf32>
    %c0_94 = arith.constant 0 : index
    %c0_95 = arith.constant 0 : index
    %c0_96 = arith.constant 0 : index
    %143 = vector.load %arg7[%c0_94, %c0_95, %c0_96] : memref<1x16x128xf32, #tpu.memory_space<vmem>>, vector<1x16x128xf32>
    %144 = vector.shape_cast %143 : vector<1x16x128xf32> to vector<16x128xf32>
    %145 = vector.shape_cast %142 : vector<16x128xf32> to vector<1x16x128xf32>
    tpu.vector_store %arg7[%c0_94, %c0_95, %c0_96], %145 {strides = array<i32>} : memref<1x16x128xf32, #tpu.memory_space<vmem>>, vector<1x16x128xf32>,
    %cst_97 = arith.constant 0.000000e+00 : f32
    %146 = vector.broadcast %cst_97 : f32 to vector<8x128xf32>
    %c0_98 = arith.constant 0 : index
    %c0_99 = arith.constant 0 : index
    %c0_100 = arith.constant 0 : index
    %c0_101 = arith.constant 0 : index
    %147 = vector.load %arg9[%c0_98, %c0_99, %c0_100, %c0_101] : memref<1x1x8x128xf32, #tpu.memory_space<vmem>>, vector<1x1x8x128xf32>
    %148 = vector.shape_cast %147 : vector<1x1x8x128xf32> to vector<8x128xf32>
    %149 = vector.shape_cast %146 : vector<8x128xf32> to vector<1x1x8x128xf32>
    tpu.vector_store %arg9[%c0_98, %c0_99, %c0_100, %c0_101], %149 {strides = array<i32>} : memref<1x1x8x128xf32, #tpu.memory_space<vmem>>, vector<1x1x8x128xf32>,
    %150 = vector.shape_cast %47 : vector<1x1xf32> to vector<1x1xf32>
    %151 = vector.broadcast %150 : vector<1x1xf32> to vector<1x128xf32>
    %c0_102 = arith.constant 0 : index
    %c0_103 = arith.constant 0 : index
    %c0_104 = arith.constant 0 : index
    %c0_105 = arith.constant 0 : index
    %152 = vector.load %arg9[%c0_102, %c0_103, %c0_104, %c0_105] : memref<1x1x8x128xf32, #tpu.memory_space<vmem>>, vector<1x1x1x128xf32>
    %153 = vector.shape_cast %152 : vector<1x1x1x128xf32> to vector<1x128xf32>
    %154 = vector.shape_cast %151 : vector<1x128xf32> to vector<1x1x1x128xf32>
    tpu.vector_store %arg9[%c0_102, %c0_103, %c0_104, %c0_105], %154 {strides = array<i32>} : memref<1x1x8x128xf32, #tpu.memory_space<vmem>>, vector<1x1x1x128xf32>,
    return
  }
  func.func @transform_0(%arg0: i32, %arg1: i32) -> (i32, i32, i32, i32) {
    %c0_i32 = arith.constant 0 : i32
    %c0_i32_0 = arith.constant 0 : i32
    %c0_i32_1 = arith.constant 0 : i32
    return %arg0, %arg1, %c0_i32, %c0_i32_0 : i32, i32, i32, i32
  }
  func.func @transform_1(%arg0: i32, %arg1: i32) -> (i32, i32, i32) {
    %c0_i32 = arith.constant 0 : i32
    %c0_i32_0 = arith.constant 0 : i32
    %c0_i32_1 = arith.constant 0 : i32
    %c0_i32_2 = arith.constant 0 : i32
    return %c0_i32, %c0_i32_0, %c0_i32_1 : i32, i32, i32
  }
  func.func @transform_2(%arg0: i32, %arg1: i32) -> (i32, i32, i32, i32) {
    %c0_i32 = arith.constant 0 : i32
    %c0_i32_0 = arith.constant 0 : i32
    %c0_i32_1 = arith.constant 0 : i32
    %c0_i32_2 = arith.constant 0 : i32
    %c0_i32_3 = arith.constant 0 : i32
    return %c0_i32, %c0_i32_0, %c0_i32_1, %c0_i32_2 : i32, i32, i32, i32
  }
  func.func @transform_3(%arg0: i32, %arg1: i32) -> (i32, i32, i32) {
    %c0_i32 = arith.constant 0 : i32
    %c0_i32_0 = arith.constant 0 : i32
    %c0_i32_1 = arith.constant 0 : i32
    %c0_i32_2 = arith.constant 0 : i32
    return %c0_i32, %c0_i32_0, %c0_i32_1 : i32, i32, i32
  }
  func.func @transform_4(%arg0: i32, %arg1: i32) -> (i32, i32) {
    %c0_i32 = arith.constant 0 : i32
    %c0_i32_0 = arith.constant 0 : i32
    %c0_i32_1 = arith.constant 0 : i32
    return %c0_i32, %c0_i32_0 : i32, i32
  }
  func.func @transform_5(%arg0: i32, %arg1: i32) -> (i32, i32, i32) {
    %c0_i32 = arith.constant 0 : i32
    %c0_i32_0 = arith.constant 0 : i32
    return %arg0, %arg1, %c0_i32 : i32, i32, i32
  }
  func.func @transform_6(%arg0: i32, %arg1: i32) -> (i32, i32, i32) {
    %c0_i32 = arith.constant 0 : i32
    %c0_i32_0 = arith.constant 0 : i32
    return %arg0, %arg1, %c0_i32 : i32, i32, i32
  }
  func.func @transform_7(%arg0: i32, %arg1: i32) -> (i32, i32, i32, i32) {
    %c0_i32 = arith.constant 0 : i32
    %c0_i32_0 = arith.constant 0 : i32
    %c0_i32_1 = arith.constant 0 : i32
    return %arg0, %arg1, %c0_i32, %c0_i32_0 : i32, i32, i32, i32
  }
}

</mosaic_0001>

<bundles_post_ra>
// kernel: tpu_custom_call.1
= control target key start
LH: loop header
LB: loop body
LE: loop exit
PB: predicated region body
PF: predicated region fallthrough
CT: control target
= control target key end

     0   :  { %s4923_s0 = inlined_call_operand.hbm [shape: f32[2,1,24,128], index: 0, kind: input, shape index: {}]   ;;  %s4924_s1 = inlined_call_operand.hbm [shape: f32[3,128,128], index: 1, kind: input, shape index: {}]   ;;  %s4925_s2 = inlined_call_operand.hbm [shape: f32[3,3,128,128], index: 2, kind: input, shape index: {}]   ;;  %s4926_s3 = inlined_call_operand.hbm [shape: f32[4,128,128], index: 3, kind: input, shape index: {}]   ;;  %s4927_s4 = inlined_call_operand.vmem [shape: f32[1,128], index: 4, kind: input, shape index: {}]   ;;  %s4928_s5 = inlined_call_operand.hbm [shape: f32[2,16,128], index: 5, kind: output, shape index: {0}]   ;;  %s4929_s6 = inlined_call_operand.hbm [shape: f32[2,16,128], index: 6, kind: output, shape index: {1}]   ;;  %s4930_s7 = inlined_call_operand.hbm [shape: f32[2,1,8,128], index: 7, kind: output, shape index: {2}]  }
   0x1   :  { %4942 = sst [smem:[#allocation21_spill]] %s4928_s5 }
   0x2   :  { %13 = vsyncpa [#allocation3], 0 }
   0x3   :  { %15 = vsyncpa [#allocation3 + $0x1], 0 }
   0x4   :  { %16 = vsyncpa [#allocation6], 0 }
   0x5   :  { %17 = vsyncpa [#allocation9], 0 }
   0x6   :  { %18 = vsyncpa [#allocation4], 0 }
   0x7   :  { %20 = vsyncpa [#allocation4 + $0x1], 0 }
   0x8   :  { %21 = vsyncpa [#allocation12], 0 }
   0x9   :  { %23 = vsyncpa [#allocation12 + $0x1], 0  ;;  %s4253_s24 = smov 0   ;;  %s4255_s25 = smov 0  }
   0xa   :  { %s4257_s26 = smov 0   ;;  %s4259_s27 = smov 0  }
   0xb   :  { %s4261_s28 = smov 0   ;;  %s4263_s29 = smov 0  }
   0xc LB: > { %4943 = sst [smem:[#allocation19_spill]] %s4177_s24  ;;  %s4284_s30 = sadd.s32 4294967295, %s4197_s29   ;;  %s4197_s29 = sphi %s4263_s29, %s29_s29   ;;  %s4193_s28 = sphi %s4261_s28, %s4973_s28   ;;  %s4189_s27 = sphi %s4259_s27, %s4972_s27   ;;  %s4185_s26 = sphi %s4257_s26, %s4971_s26   ;;  %s4181_s25 = sphi %s4255_s25, %s4970_s25   ;;  %s4177_s24 = sphi %s4253_s24, %s4969_s24  }
   0xd   : > { %s4932_s8 = sadd.s32 4294967294, %s4197_s29   ;;  %p63_p0 = scmp.ne.s32.totalorder %s4181_s25, %s4177_s24 }
   0xe   : > { %p4931_p1 = scmp.eq.s32.totalorder %s4284_s30, 0  ;;  %p179_p3 = scmp.eq.s32.totalorder %s4932_s8, 1 }
   0xf   : > { %p2393_p5 = scmp.ge.s32.totalorder %s4197_s29, 1  ;;  %p242_p7 = scmp.lt.s32.totalorder %s4197_s29, 3 }
  0x10   : > { %p4295_p4 = por %p4931_p1, %p63_p0  ;;  %p4300_p6 = por %p179_p3, %p63_p0 }
  0x11   : > { %p4305_p8 = pnand %p2393_p5, %p242_p7  ;;  %s4199_s12 = smov [#allocation5]  }
  0x12   : > { %s4944_s9 = scalar_select %p4295_p4, 1, 0 }
  0x13   : > { %s4945_s10 = scalar_select %p4300_p6, 1, 0 }
  0x14   : > { %s4947_s11 = scalar_select %p4305_p8, 1, 0 }
  0x15   : > { %4946 = sst [smem:[#allocation20_spill]] %s4945_s10  ;;  %s254_s13 = sshll.u32 %s4199_s12, 4  ;;  %s4309_s13 = int_to_ptr.vmem [resolvable:$true] %s254_s13 }
  0x16   : > { %p3843_p9 = pneg %p4305_p8  ;;  %s4200_s15 = smov [#allocation7]  }
  0x17   : > { %s267_s16 = sshll.u32 %s4200_s15, 4  ;;  %s4201_s17 = smov [#allocation8]   ;;  %s4320_s16 = int_to_ptr.vmem [resolvable:$true] %s267_s16 }
  0x18   : > { %p4316_p11 = pnand %p3843_p9, %p4931_p1  ;;  %s4322_s18 = sshll.u32 %s4201_s17, 4  ;;  %s281_s18 = int_to_ptr.vmem [resolvable:$true] %s4322_s18 }
  0x19   : > { %s3933_s21 = scalar_lea.hbm %s4924_s1, 6144 }
  0x1a   : > { %p3934_p12 = scmp.ne.s32.totalorder %s4924_s1, %s3933_s21  ;;  %p4332_p13 = pneg %p4316_p11 }
  0x1b   : > { %p3940_p5 = scmp.lt.u32.totalorder %s3933_s21, %s4924_s1 }
  0x1c   : > { %p3936_p0 = pnand %p4332_p13, %p3934_p12 }
  0x1e   : > { %p3937_p3 = pneg %p3936_p0 }
  0x20   : > { %p3942_p7 = pnand %p3940_p5, %p3937_p3 }
  0x22   : > { %3945 = shalt.err (!%p3942_p7)
}
  0x23   : > { %s3946_s19 = scalar_lea.vmem %s4309_s13, 6144  ;;  %p3954_p2 = scmp.lt.s32.totalorder %s4309_s13, %s4309_s13 }
  0x24   : > { %p3947_p9 = scmp.ne.s32.totalorder %s4309_s13, %s3946_s19  ;;  %p3955_p6 = scmp.lt.s32.totalorder %s3946_s19, %s3946_s19 }
  0x26   : > { %p3949_p10 = pnand %p3947_p9, %p4332_p13  ;;  %p3956_p12 = por %p3955_p6, %p3954_p2 }
  0x28   : > { %p3950_p1 = pneg %p3949_p10 }
  0x2a   : > { %p3957_p0 = pnand %p3956_p12, %p3950_p1 }
  0x2c   : > { %3960 = shalt.err (!%p3957_p0)
}
  0x2d   : > { %s4938_s20 = smov 128   ;;  %s4939_s21 = smov 8  }
  0x2e   : > { %3846 = dma.hbm_to_vmem [thread:$0]  (!%p4316_p11), %s4924_s1, 6144, %s4309_s13, [#allocation6], %s4938_s20, %s4938_s20, %s4939_s21  }
  0x2f   : > { %s3961_s19 = scalar_lea.hbm %s4925_s2, 18432 }
  0x30   : > { %p3962_p1 = scmp.ne.s32.totalorder %s4925_s2, %s3961_s19  ;;  %p3968_p10 = scmp.lt.u32.totalorder %s3961_s19, %s4925_s2 }
  0x32   : > { %p3964_p2 = pnand %p3962_p1, %p4332_p13 }
  0x34   : > { %p3965_p6 = pneg %p3964_p2 }
  0x36   : > { %p3970_p3 = pnand %p3968_p10, %p3965_p6 }
  0x38   : > { %3973 = shalt.err (!%p3970_p3)
}
  0x39   : > { %s3974_s13 = scalar_lea.vmem %s4320_s16, 18432  ;;  %p3982_p12 = scmp.lt.s32.totalorder %s4320_s16, %s4320_s16 }
  0x3a   : > { %p3975_p5 = scmp.ne.s32.totalorder %s4320_s16, %s3974_s13  ;;  %p3983_p0 = scmp.lt.s32.totalorder %s3974_s13, %s3974_s13 }
  0x3c   : > { %p3977_p7 = pnand %p3975_p5, %p4332_p13  ;;  %p3984_p1 = por %p3983_p0, %p3982_p12 }
  0x3e   : > { %p3978_p9 = pneg %p3977_p7 }
  0x40   : > { %p3985_p2 = pnand %p3984_p1, %p3978_p9 }
  0x42   : > { %3988 = shalt.err (!%p3985_p2)
}
  0x43   : > { %3849 = dma.hbm_to_vmem [thread:$0]  (!%p4316_p11), %s4925_s2, 18432, %s4320_s16, [#allocation6], %s4938_s20, %s4938_s20, %s4939_s21  }
  0x44   : > { %s3989_s22 = scalar_lea.hbm %s4926_s3, 8192 }
  0x45   : > { %p3990_p6 = scmp.ne.s32.totalorder %s4926_s3, %s3989_s22  ;;  %p3996_p5 = scmp.lt.u32.totalorder %s3989_s22, %s4926_s3 }
  0x47   : > { %p3992_p10 = pnand %p3990_p6, %p4332_p13 }
  0x49   : > { %p3993_p3 = pneg %p3992_p10 }
  0x4b   : > { %p3998_p7 = pnand %p3996_p5, %p3993_p3 }
  0x4d   : > { %4001 = shalt.err (!%p3998_p7)
}
  0x4e   : > { %s4002_s13 = scalar_lea.vmem %s281_s18, 8192  ;;  %p4010_p1 = scmp.lt.s32.totalorder %s281_s18, %s281_s18 }
  0x4f   : > { %p4003_p9 = scmp.ne.s32.totalorder %s281_s18, %s4002_s13  ;;  %p4011_p2 = scmp.lt.s32.totalorder %s4002_s13, %s4002_s13 }
  0x51   : > { %p4005_p12 = pnand %p4003_p9, %p4332_p13  ;;  %p4012_p4 = por %p4011_p2, %p4010_p1 }
  0x53   : > { %p4006_p0 = pneg %p4005_p12 }
  0x55   : > { %p4013_p8 = pnand %p4012_p4, %p4006_p0 }
  0x57   : > { %4016 = shalt.err (!%p4013_p8)
}
  0x58   : > { %3852 = dma.hbm_to_vmem [thread:$0]  (!%p4316_p11), %s4926_s3, 8192, %s281_s18, [#allocation9], %s4938_s20, %s4938_s20, %s4939_s21  }
  0x59   : > { %s50_s12 = sadd.s32 1, %s4185_s26  ;;  %s41_s14 = sadd.s32 1, %s4193_s28 }
  0x5a   : > { %p57_p4 = scmp.ne.s32.totalorder %s4185_s26, %s4181_s25  ;;  %p43_p8 = scmp.ge.s32.totalorder %s41_s14, 2 }
  0x5b   : > { %p58_p13 = scmp.eq.s32.totalorder %s4197_s29, 0  ;;  %p4950_p6 = scmp.eq.s32.totalorder %s4284_s30, 1 }
  0x5c   : > { %p3870_p3 = scmp.lt.s32.totalorder %s4197_s29, 2  ;;  %s4975_s14 = smov (%p43_p8, %s41_s14), 0 }
  0x5d   : > { %p4411_p10 = por %p4950_p6, %p57_p4  ;;  %p59_p5 = por %p58_p13, %p57_p4 }
  0x5e   : > { %s297_s8 = sand.u32 1, %s4185_s26   ;;  %s45_s10 = ssub.s32 %s4193_s28, %s4975_s14 }
  0x5f   : > { %p48_p7 = scmp.eq.s32.totalorder %s45_s10, 0  ;;  %s3818_s18 = smul.u32 24, %s297_s8 }
  0x60   : > { %s3819_s22 = smul.u32 384, %s4193_s28  ;;  %p4422_p11 = pnand %p3870_p3, %p59_p5 }
  0x61   : > { %s4427_s15 = scalar_select %p48_p7, %s4185_s26, %s50_s12  }
  0x62   : > { %s4432_s13 = scalar_lea.hbm %s4923_s0, %s3819_s22  ;;  %s301_s16 = scalar_lea.vmem [#allocation2], %s3818_s18 }
  0x63   : > { %s310_s5 = sshll.u32 %s301_s16, 4  ;;  %s4436_s10 = scalar_lea.sflag [#allocation3], %s297_s8  ;;  %s4434_s5 = int_to_ptr.vmem [resolvable:$true] %s310_s5 }
  0x64   : > { %s4017_s20 = scalar_lea.hbm %s4432_s13, 384  ;;  %p4019_p12 = pneg %p4422_p11 }
  0x65   : > { %p4018_p9 = scmp.ne.s32.totalorder %s4432_s13, %s4017_s20  ;;  %s4022_s17 = scalar_lea.hbm %s4923_s0, 768 }
  0x66   : > { %p4023_p2 = scmp.lt.u32.totalorder %s4432_s13, %s4923_s0  ;;  %p4024_p4 = scmp.lt.u32.totalorder %s4022_s17, %s4017_s20 }
  0x67   : > { %p4020_p0 = pnand %p4019_p12, %p4018_p9  ;;  %p4026_p13 = scmp.lt.u32.totalorder %s4017_s20, %s4432_s13 }
  0x68   : > { %p4025_p8 = por %p4024_p4, %p4023_p2 }
  0x69   : > { %p4021_p1 = pneg %p4020_p0 }
  0x6a   : > { %p4027_p6 = por %p4026_p13, %p4025_p8 }
  0x6c   : > { %p4028_p3 = pnand %p4027_p6, %p4021_p1 }
  0x6e   : > { %4031 = shalt.err (!%p4028_p3)
}
  0x6f   : > { %s4032_s8 = scalar_lea.vmem %s4434_s5, 384  ;;  %s4204_s18 = smov [#allocation2]  }
  0x70   : > { %p4033_p5 = scmp.ne.s32.totalorder %s4434_s5, %s4032_s8  ;;  %s4037_s16 = sshll.u32 %s4204_s18, 4  ;;  %s4038_s16 = int_to_ptr.vmem [resolvable:$false] %s4037_s16 }
  0x71   : > { %s4039_s21 = scalar_lea.vmem %s4038_s16, 768  ;;  %p4040_p0 = scmp.lt.s32.totalorder %s4434_s5, %s4038_s16 }
  0x72   : > { %p4035_p7 = pnand %p4033_p5, %p4019_p12  ;;  %p4041_p2 = scmp.lt.s32.totalorder %s4039_s21, %s4032_s8 }
  0x74   : > { %p4036_p9 = pneg %p4035_p7  ;;  %p4042_p4 = por %p4041_p2, %p4040_p0 }
  0x76   : > { %p4043_p8 = pnand %p4042_p4, %p4036_p9 }
  0x78   : > { %4046 = shalt.err (!%p4043_p8)
}
  0x79   : > { %s4953_s20 = smov 8   ;;  %s4954_s12 = smov 128  }
  0x7a   : > { %3856 = dma.hbm_to_vmem [thread:$0]  (!%p4422_p11), %s4432_s13, 384, %s4434_s5, %s4436_s10, %s4954_s12, %s4954_s12, %s4953_s20  }
  0x7b   : > { %p4955_p12 = scmp.ne.s32.totalorder %s4947_s11, 0 }
  0x7c   : > { %s4470_s22 = sand.u32 (!%p4955_p12), 1, %s4181_s25   ;;  %p4956_p1 = scmp.ne.s32.totalorder (!%p4955_p12), %s4944_s9, 0 }
  0x7d   : > { %322 = sbr.rel (%p4955_p12) target bundleno = 1527 (0x5f7), region = 40  ;;  %s325_s19 = scalar_lea.sflag (!%p4955_p12), [#allocation3], %s4470_s22 }
  0x7e   : > { %s3820_s17 = smul.u32 (!%p4955_p12), 24, %s4470_s22 }
  0x80   : > { %s4474_s8 = scalar_lea.vmem (!%p4955_p12), [#allocation2], %s3820_s17 }
  0x84   : > { %4156 = dma.done.wait (%p4956_p1), %s325_s19, 384  }
  0x85   : > { %4158 = vsyncadd (%p4956_p1), %s325_s19, 4294966912  ;;  %p4957_p11 = scmp.eq.s32.totalorder %s4284_s30, 0 }
  0x87   : > { %4160 = dma.done.wait (%p4957_p11), [#allocation6], 24576   ;;  %p4958_p13 = pmov %p4957_p11 }
  0x88   : > { %p4959_p6 = pmov %p4957_p11 }
  0x89   : > { %4162 = vsyncadd (%p4958_p13), [#allocation6], 4294942720 }
  0x8a   : > { %4164 = dma.done.wait (%p4959_p6), [#allocation9], 8192   ;;  %p4960_p3 = pmov %p4959_p6 }
  0x8b   : > { %v4205_v0 = vmov 0.0|0.0   ;;  %vm4206_vm0 = vmmov 0   ;;  %v4207_v1 = vmov 0.0   ;;  %v396_v2 = vld [vmem:[#allocation5] sm:$0xff]  ;;  %v397_v3 = vld [vmem:[#allocation5 + $0x8] sm:$0xff]  ;;  %v398_v4 = vld [vmem:[#allocation5 + $0x10] sm:$0xff] }
  0x8c   : > { %4166 = vsyncadd (%p4960_p3), [#allocation9], 4294959104  ;;  %3359 = vmatprep.subr.bf16.mxu0 %v4205_v0  ;;  %3335 = vmatprep.subr.bf16.mxu1 %v4205_v0  ;;  %v3360_v5 = vpack.c.bf16 %v397_v3, %v396_v2  ;;  %v399_v6 = vld [vmem:[#allocation5 + $0x18] sm:$0xff]  ;;  %v400_v8 = vld [vmem:[#allocation5 + $0x20] sm:$0xff]  ;;  %vm432_vm1 = vcmask 1046528   ;;  %vm618_vm2 = vcmask 1045504  }
  0x8d   : > { %2794 = vmatprep.mubr.msk.f32.mxu0 %vm4206_vm0, %v4207_v1  ;;  %2753 = vmatprep.mubr.msk.f32.mxu1 %vm4206_vm0, %v4207_v1  ;;  %v3363_v7 = vpack.c.bf16 %v399_v6, %v398_v4  ;;  %v401_v9 = vld [vmem:[#allocation5 + $0x28] sm:$0xff]  ;;  %v413_v10 = vld [vmem:[#allocation5 + $0x80] sm:$0xff]  ;;  %v415_v14 = vld [vmem:[#allocation5 + $0x90] sm:$0xff]  ;;  %s2403_s9 = sshll.u32 %s4470_s22, 4  ;;  %vm762_vm6 = vcmask 1044480   ;;  %s2405_s23 = sshll.u32 %s4470_s22, 3 }
  0x8e   : > { %3361 = vmatpush3.bf16.msra.mxu0 %v3360_v5  ;;  %v414_v11 = vld [vmem:[#allocation5 + $0x88] sm:$0xff]  ;;  %v3366_v13 = vpack.c.bf16 %v401_v9, %v400_v8  ;;  %v416_v15 = vld [vmem:[#allocation5 + $0x98] sm:$0xff]  ;;  %v402_v16 = vld [vmem:[#allocation5 + $0x30] sm:$0xff]  ;;  %s4578_s11 = scalar_lea.vmem [#allocation11], %s2403_s9  ;;  %s4651_s13 = scalar_lea.vmem [#allocation13], %s2405_s23  ;;  %vm1098_vm9 = vcmask 1040384  }
  0x8f   : > { %3362 = vmatprep.subr.bf16.mxu0 %v4205_v0  ;;  %v3336_v12 = vpack.c.bf16 %v414_v11, %v413_v10  ;;  %v403_v17 = vld [vmem:[#allocation5 + $0x38] sm:$0xff]  ;;  %v3339_v18 = vpack.c.bf16 %v416_v15, %v415_v14  ;;  %v417_v19 = vld [vmem:[#allocation5 + $0xa0] sm:$0xff]  ;;  %v418_v20 = vld [vmem:[#allocation5 + $0xa8] sm:$0xff]  ;;  %2149 = vst [vmem:[%s4651_s13] sm:$0xff] %v4207_v1  ;;  %vm1611_vm10 = vcmask 1041408   ;;  %vm1935_vm11 = vcmask 1043456   ;;  %s2196_s10 = sshll.u32 %s4578_s11, 4  ;;  %s4793_s10 = int_to_ptr.vmem [resolvable:$true] %s2196_s10 }
  0x90   : > { %v3369_v21 = vpack.c.bf16 %v403_v17, %v402_v16  ;;  %v404_v22 = vld [vmem:[#allocation5 + $0x40] sm:$0xff]  ;;  %v405_v23 = vld [vmem:[#allocation5 + $0x48] sm:$0xff]  ;;  %v3342_v24 = vpack.c.bf16 %v418_v20, %v417_v19  ;;  %v419_v25 = vld [vmem:[#allocation5 + $0xb0] sm:$0xff]  ;;  %vm2024_vm12 = vcmask 1042432   ;;  %s2157_s18 = sand.u32 1, %s4284_s30   ;;  %s4940_s16 = sshll.u32 %s4189_s27, 8 }
  0x91   : > { %3337 = vmatpush3.bf16.msra.mxu1 %v3336_v12  ;;  %v420_v26 = vld [vmem:[#allocation5 + $0xb8] sm:$0xff]  ;;  %v3372_v27 = vpack.c.bf16 %v405_v23, %v404_v22  ;;  %v406_v28 = vld [vmem:[#allocation5 + $0x50] sm:$0xff]  ;;  %v421_v31 = vld [vmem:[#allocation5 + $0xc0] sm:$0xff]  ;;  %s2213_s21 = sshll.u32 %s4651_s13, 4  ;;  %s4801_s17 = scalar_lea.hbm %s4929_s6, %s4940_s16  ;;  %s4832_s21 = int_to_ptr.vmem [resolvable:$true] %s2213_s21 }
  0x92   : > { %3364 = vmatpush3.bf16.msra.mxu0 %v3363_v7  ;;  %3338 = vmatprep.subr.bf16.mxu1 %v4205_v0  ;;  %v407_v29 = vld [vmem:[#allocation5 + $0x58] sm:$0xff]  ;;  %v3345_v30 = vpack.c.bf16 %v420_v26, %v419_v25  ;;  %v422_v32 = vld [vmem:[#allocation5 + $0xc8] sm:$0xff]  ;;  %v408_v34 = vld [vmem:[#allocation5 + $0x60] sm:$0xff]  ;;  %s4803_s19 = scalar_lea.sflag [#allocation12], %s2157_s18  ;;  %s4208_s30 = smov [#allocation11]  }
  0x93   : > { %3365 = vmatprep.subr.bf16.mxu0 %v4205_v0  ;;  %v3375_v33 = vpack.c.bf16 %v407_v29, %v406_v28  ;;  %v409_v35 = vld [vmem:[#allocation5 + $0x68] sm:$0xff]  ;;  %v3348_v36 = vpack.c.bf16 %v422_v32, %v421_v31  ;;  %v423_v37 = vld [vmem:[#allocation5 + $0xd0] sm:$0xff]  ;;  %v424_v38 = vld [vmem:[#allocation5 + $0xd8] sm:$0xff] }
  0x94   : > { %v3378_v39 = vpack.c.bf16 %v409_v35, %v408_v34  ;;  %v410_v40 = vld [vmem:[#allocation5 + $0x70] sm:$0xff]  ;;  %v411_v41 = vld [vmem:[#allocation5 + $0x78] sm:$0xff]  ;;  %v3351_v42 = vpack.c.bf16 %v424_v38, %v423_v37  ;;  %v425_v43 = vld [vmem:[#allocation5 + $0xe0] sm:$0xff] }
  0x95   : > { %3340 = vmatpush3.bf16.msra.mxu1 %v3339_v18  ;;  %v426_v44 = vld [vmem:[#allocation5 + $0xe8] sm:$0xff]  ;;  %v3381_v45 = vpack.c.bf16 %v411_v41, %v410_v40  ;;  %v602_v46 = vld [vmem:[#allocation5 + $0x100] sm:$0xff]  ;;  %v427_v49 = vld [vmem:[#allocation5 + $0xf0] sm:$0xff] }
  0x96   : > { %3367 = vmatpush3.bf16.msra.mxu0 %v3366_v13  ;;  %3341 = vmatprep.subr.bf16.mxu1 %v4205_v0  ;;  %v603_v47 = vld [vmem:[#allocation5 + $0x108] sm:$0xff]  ;;  %v3354_v48 = vpack.c.bf16 %v426_v44, %v425_v43  ;;  %v428_v50 = vld [vmem:[#allocation5 + $0xf8] sm:$0xff]  ;;  %v604_v53 = vld [vmem:[#allocation5 + $0x110] sm:$0xff] }
  0x97   : > { %3368 = vmatprep.subr.bf16.mxu0 %v4205_v0  ;;  %v4508_v51 = vld [vmem:[%s4474_s8] sm:$0xff]  ;;  %v3384_v52 = vpack.c.bf16 %v603_v47, %v602_v46  ;;  %v605_v54 = vld [vmem:[#allocation5 + $0x118] sm:$0xff]  ;;  %v3357_v56 = vpack.c.bf16 %v428_v50, %v427_v49  ;;  %v797_v59 = vld [vmem:[#allocation7 + $0x80] sm:$0xff] }
  0x98   : > { %v4512_v55 = vld [vmem:[%s4474_s8 + $0x8] sm:$0xff]  ;;  %v433_v57 = vrot.slane %v4508_v51, 1  ;;  %v798_v60 = vld [vmem:[#allocation7 + $0x88] sm:$0xff]  ;;  %v3387_v61 = vpack.c.bf16 %v605_v54, %v604_v53  ;;  %v606_v62 = vld [vmem:[#allocation5 + $0x120] sm:$0xff]  ;;  %v619_v34 = vrot.slane %v4508_v51, 2 }
  0x99   : > { %3343 = vmatpush3.bf16.msra.mxu1 %v3342_v24  ;;  %v434_v58 = vrot.slane %v4512_v55, 1  ;;  %v607_v63 = vld [vmem:[#allocation5 + $0x128] sm:$0xff]  ;;  %v4522_v2 = vld [vmem:[%s4474_s8 + $0x10] sm:$0xff]  ;;  %v3408_v5 = vpack.c.bf16 %v798_v60, %v797_v59  ;;  %v799_v6 = vld [vmem:[#allocation7 + $0x90] sm:$0xff]  ;;  %v620_v35 = vrot.slane %v4512_v55, 2  ;;  %s4047_s8 = scalar_lea.vmem %s4793_s10, 256 }
  0x9a   : > { %3370 = vmatpush3.bf16.msra.mxu0 %v3369_v21  ;;  %3344 = vmatprep.subr.bf16.mxu1 %v4205_v0  ;;  %v436_v3 = vrot.slane %v4522_v2, 1  ;;  %v800_v7 = vld [vmem:[#allocation7 + $0x98] sm:$0xff]  ;;  %v3390_v8 = vpack.c.bf16 %v607_v63, %v606_v62  ;;  %v608_v9 = vld [vmem:[#allocation5 + $0x130] sm:$0xff]  ;;  %v801_v13 = vld [vmem:[#allocation7 + $0xa0] sm:$0xff]  ;;  %v622_v37 = vrot.slane %v4522_v2, 2  ;;  %p4048_p5 = scmp.ne.s32.totalorder %s4793_s10, %s4047_s8 }
  0x9b   : > { %3371 = vmatprep.subr.bf16.mxu0 %v4205_v0  ;;  %v435_v4 = vsel %vm432_vm1, %v433_v57, %v434_v58  ;;  %v609_v10 = vld [vmem:[#allocation5 + $0x138] sm:$0xff]  ;;  %v3411_v12 = vpack.c.bf16 %v800_v7, %v799_v6  ;;  %v802_v14 = vld [vmem:[#allocation7 + $0xa8] sm:$0xff]  ;;  %v610_v16 = vld [vmem:[#allocation5 + $0x140] sm:$0xff]  ;;  %v621_v38 = vsel %vm618_vm2, %v619_v34, %v620_v35 }
  0x9c   : > { %v437_v11 = vsel %vm432_vm1, %v434_v58, %v436_v3  ;;  %v3393_v15 = vpack.c.bf16 %v609_v10, %v608_v9  ;;  %v611_v17 = vld [vmem:[#allocation5 + $0x148] sm:$0xff]  ;;  %v3414_v18 = vpack.c.bf16 %v802_v14, %v801_v13  ;;  %v803_v19 = vld [vmem:[#allocation7 + $0xb0] sm:$0xff]  ;;  %v804_v20 = vld [vmem:[#allocation7 + $0xb8] sm:$0xff]  ;;  %p4049_p7 = pnand %p4048_p5, %p4411_p10 }
  0x9d   : > { %3346 = vmatpush3.bf16.msra.mxu1 %v3345_v30  ;;  %v3396_v21 = vpack.c.bf16 %v611_v17, %v610_v16  ;;  %v612_v22 = vld [vmem:[#allocation5 + $0x150] sm:$0xff]  ;;  %v613_v23 = vld [vmem:[#allocation5 + $0x158] sm:$0xff]  ;;  %v3417_v24 = vpack.c.bf16 %v804_v20, %v803_v19  ;;  %v805_v25 = vld [vmem:[#allocation7 + $0xc0] sm:$0xff] }
  0x9e   : > { %3373 = vmatpush3.bf16.msra.mxu0 %v3372_v27  ;;  %3347 = vmatprep.subr.bf16.mxu1 %v4205_v0  ;;  %v806_v26 = vld [vmem:[#allocation7 + $0xc8] sm:$0xff]  ;;  %v3399_v27 = vpack.c.bf16 %v613_v23, %v612_v22  ;;  %v614_v28 = vld [vmem:[#allocation5 + $0x160] sm:$0xff]  ;;  %v616_v32 = vld [vmem:[#allocation5 + $0x170] sm:$0xff]  ;;  %p4050_p9 = pneg %p4049_p7 }
  0x9f   : > { %3374 = vmatprep.subr.bf16.mxu0 %v4205_v0  ;;  %v615_v29 = vld [vmem:[#allocation5 + $0x168] sm:$0xff]  ;;  %v3420_v30 = vpack.c.bf16 %v806_v26, %v805_v25  ;;  %v807_v40 = vld [vmem:[#allocation7 + $0xd0] sm:$0xff]  ;;  %v808_v41 = vld [vmem:[#allocation7 + $0xd8] sm:$0xff] }
  0xa0   : > { %v3402_v31 = vpack.c.bf16 %v615_v29, %v614_v28  ;;  %v809_v43 = vld [vmem:[#allocation7 + $0xe0] sm:$0xff]  ;;  %v810_v44 = vld [vmem:[#allocation7 + $0xe8] sm:$0xff]  ;;  %v811_v46 = vld [vmem:[#allocation7 + $0xf0] sm:$0xff] }
  0xa1   : > { %3349 = vmatpush3.bf16.msra.mxu1 %v3348_v36  ;;  %v812_v47 = vld [vmem:[#allocation7 + $0xf8] sm:$0xff]  ;;  %v785_v34 = vld [vmem:[#allocation7 + $0x28] sm:$0xff] }
  0xa2   : > { %3376 = vmatpush3.bf16.msra.mxu0 %v3375_v33  ;;  %3350 = vmatprep.subr.bf16.mxu1 %v4205_v0  ;;  %v617_v33 = vld [vmem:[#allocation5 + $0x178] sm:$0xff] }
  0xa3   : > { %3377 = vmatprep.subr.bf16.mxu0 %v4205_v0  ;;  %v3405_v36 = vpack.c.bf16 %v617_v33, %v616_v32  ;;  %v783_v19 = vld [vmem:[#allocation7 + $0x18] sm:$0xff]  ;;  %v784_v33 = vld [vmem:[#allocation7 + $0x20] sm:$0xff] }
  0xa5   : > { %3352 = vmatpush3.bf16.msra.mxu1 %v3351_v42  ;;  %v3423_v42 = vpack.c.bf16 %v808_v41, %v807_v40 }
  0xa6   : > { %3379 = vmatpush3.bf16.msra.mxu0 %v3378_v39  ;;  %3353 = vmatprep.subr.bf16.mxu1 %v4205_v0  ;;  %v623_v39 = vsel %vm618_vm2, %v620_v35, %v622_v37 }
  0xa7   : > { %3380 = vmatprep.subr.bf16.mxu0 %v4205_v0 }
  0xa9   : > { %3355 = vmatpush3.bf16.msra.mxu1 %v3354_v48  ;;  %v3429_v48 = vpack.c.bf16 %v812_v47, %v811_v46 }
  0xaa   : > { %3382 = vmatpush3.bf16.msra.mxu0 %v3381_v45  ;;  %3356 = vmatprep.subr.bf16.mxu1 %v4205_v0  ;;  %v3426_v45 = vpack.c.bf16 %v810_v44, %v809_v43  ;;  %v786_v44 = vld [vmem:[#allocation7 + $0x30] sm:$0xff] }
  0xab   : > { %3383 = vmatprep.subr.bf16.mxu0 %v4205_v0 }
  0xad   : > { %2795 = vmatmul.mubr.f32.vlgmr.msra.gmra.mrb[0].mxu0 %v4508_v51  ;;  %3358 = vmatpush3.bf16.msra.mxu1 %v3357_v56 }
  0xae   : > { %3385 = vmatpush3.bf16.msra.mxu0 %v3384_v52  ;;  %2797 = vmatprep.mubr.msk.f32.mxu0 %vm4206_vm0, %v4207_v1 }
  0xaf   : > { %3386 = vmatprep.subr.bf16.mxu0 %v4205_v0  ;;  %3407 = vmatprep.subr.bf16.mxu1 %v4205_v0 }
  0xb0   : > { %2754 = vmatmul.mubr.f32.vlgmr.msra.gmra.mrb[0].mxu1 %v435_v4  ;;  %v781_v4 = vld [vmem:[#allocation7 + $0x8] sm:$0xff] }
  0xb1   : > { %2798 = vmatmul.mubr.f32.gmra.mrb[2].mxu0 %v4512_v55  ;;  %2756 = vmatprep.mubr.msk.f32.mxu1 %vm4206_vm0, %v4207_v1  ;;  %v387_v55 = vlaneseq }
  0xb2   : > { %3388 = vmatpush3.bf16.msra.mxu0 %v3387_v61  ;;  %2800 = vmatprep.mubr.msk.f32.mxu0 %vm4206_vm0, %v4207_v1 }
  0xb3   : > { %3389 = vmatprep.subr.bf16.mxu0 %v4205_v0  ;;  %3409 = vmatpush3.bf16.msra.mxu1 %v3408_v5  ;;  %v388_v56 = vshrl.u32 %v387_v55, 7  ;;  %v793_v55 = vld [vmem:[#allocation7 + $0x68] sm:$0xff] }
  0xb4   : > { %3410 = vmatprep.subr.bf16.mxu1 %v4205_v0  ;;  %2757 = vmatmul.mubr.f32.gmra.mrb[2].mxu1 %v437_v11 }
  0xb5   : > { %2801 = vmatmul.mubr.f32.gmra.mrb[4].mxu0 %v4522_v2  ;;  %2759 = vmatprep.mubr.msk.f32.mxu1 %vm4206_vm0, %v4207_v1  ;;  %v4563_v57 = vadd.s32 4294967293, %v388_v56  ;;  %v390_v59 = vadd.s32 16, %v388_v56 }
  0xb6   : > { %3391 = vmatpush3.bf16.msra.mxu0 %v3390_v8  ;;  %2835 = vmatprep.mubr.msk.f32.mxu0 %vm4206_vm0, %v4207_v1 }
  0xb7   : > { %3392 = vmatprep.subr.bf16.mxu0 %v4205_v0  ;;  %3412 = vmatpush3.bf16.msra.mxu1 %v3411_v12  ;;  %vm713_vm3 = vcmp.ge.s32.totalorder %v4563_v57, 0  ;;  %v4570_v2 = vadd.s32 4294967293, %v390_v59  ;;  %v795_v59 = vld [vmem:[#allocation7 + $0x78] sm:$0xff] }
  0xb8   : > { %3413 = vmatprep.subr.bf16.mxu1 %v4205_v0  ;;  %2760 = vmatmul.mubr.f32.gmra.mrb[4].mxu1 %v436_v3  ;;  %v780_v3 = vld [vmem:[#allocation7] sm:$0xff] }
  0xb9   : > { %2876 = vmatprep.mubr.msk.f32.mxu1 %vm4206_vm0, %v4207_v1  ;;  %v3432_v9 = vpack.c.bf16 %v781_v4, %v780_v3  ;;  %vm718_vm5 = vcmp.lt.s32.totalorder %v4570_v2, 16  ;;  %v986_v3 = vld [vmem:[#allocation7 + $0x108] sm:$0xff] }
  0xba   : > { %3394 = vmatpush3.bf16.msra.mxu0 %v3393_v15 }
  0xbb   : > { %3395 = vmatprep.subr.bf16.mxu0 %v4205_v0  ;;  %3415 = vmatpush3.bf16.msra.mxu1 %v3414_v18  ;;  %v782_v18 = vld [vmem:[#allocation7 + $0x10] sm:$0xff] }
  0xbc   : > { %3416 = vmatprep.subr.bf16.mxu1 %v4205_v0 }
  0xbe   : > { %3397 = vmatpush3.bf16.msra.mxu0 %v3396_v21 }
  0xbf   : > { %3398 = vmatprep.subr.bf16.mxu0 %v4205_v0  ;;  %3418 = vmatpush3.bf16.msra.mxu1 %v3417_v24 }
  0xc0   : > { %3419 = vmatprep.subr.bf16.mxu1 %v4205_v0 }
  0xc2   : > { %3400 = vmatpush3.bf16.msra.mxu0 %v3399_v27 }
  0xc3   : > { %3401 = vmatprep.subr.bf16.mxu0 %v4205_v0  ;;  %3421 = vmatpush3.bf16.msra.mxu1 %v3420_v30  ;;  %v3435_v30 = vpack.c.bf16 %v783_v19, %v782_v18  ;;  %v997_v18 = vld [vmem:[#allocation7 + $0x160] sm:$0xff]  ;;  %v998_v19 = vld [vmem:[#allocation7 + $0x168] sm:$0xff] }
  0xc4   : > { %3422 = vmatprep.subr.bf16.mxu1 %v4205_v0 }
  0xc6   : > { %3403 = vmatpush3.bf16.msra.mxu0 %v3402_v31 }
  0xc7   : > { %3404 = vmatprep.subr.bf16.mxu0 %v4205_v0  ;;  %3424 = vmatpush3.bf16.msra.mxu1 %v3423_v42  ;;  %v3438_v42 = vpack.c.bf16 %v785_v34, %v784_v33  ;;  %v1113_v34 = vld [vmem:[#allocation8 + $0x90] sm:$0xff] }
  0xc8   : > { %3425 = vmatprep.subr.bf16.mxu1 %v4205_v0 }
  0xca   : > { %3406 = vmatpush3.bf16.msra.mxu0 %v3405_v36 }
  0xcb   : > { %3427 = vmatpush3.bf16.msra.mxu1 %v3426_v45  ;;  %v787_v45 = vld [vmem:[#allocation7 + $0x38] sm:$0xff] }
  0xcc   : > { %3428 = vmatprep.subr.bf16.mxu1 %v4205_v0  ;;  %v3441_v47 = vpack.c.bf16 %v787_v45, %v786_v44  ;;  %v1117_v44 = vld [vmem:[#allocation8 + $0xb0] sm:$0xff]  ;;  %v1118_v45 = vld [vmem:[#allocation8 + $0xb8] sm:$0xff] }
  0xcd   : > { %2836 = vmatmul.mubr.f32.vlgmr.msra.gmra.mrb[0].mxu0 %v621_v38 }
  0xce   : > { %2838 = vmatprep.mubr.msk.f32.mxu0 %vm4206_vm0, %v4207_v1 }
  0xcf   : > { %3430 = vmatpush3.bf16.msra.mxu1 %v3429_v48  ;;  %v788_v48 = vld [vmem:[#allocation7 + $0x40] sm:$0xff] }
  0xd0   : > { %3431 = vmatprep.subr.bf16.mxu1 %v4205_v0 }
  0xd1   : > { %2839 = vmatmul.mubr.f32.gmra.mrb[2].mxu0 %v623_v39 }
  0xd2   : > { %2841 = vmatprep.mubr.msk.f32.mxu0 %vm4206_vm0, %v4207_v1 }
  0xd5   : > { %2842 = vmatmul.mubr.f32.gmra.mrb[4].mxu0 %v622_v37 }
 0x183   : > { %v507_v49 = vpop.f32.mrb[0].mxu1 }
 0x184   : > { %v2755_v50 = vpop.f32.mrb[1].mxu1 }
 0x187   : > { %v512_v51 = vpop.f32.mrb[2].mxu1 }
 0x188   : > { %v2758_v52 = vpop.f32.mrb[3].mxu1 }
 0x189   : > { %v791_v52 = vld [vmem:[#allocation7 + $0x58] sm:$0xff] }
 0x18b   : > { %v517_v53 = vpop.f32.mrb[4].mxu1 }
 0x18c   : > { %v2761_v54 = vpop.f32.mrb[5].mxu1 }
 0x18d   : > { %v792_v54 = vld [vmem:[#allocation7 + $0x60] sm:$0xff] }
 0x18e   : > { %v3450_v56 = vpack.c.bf16 %v793_v55, %v792_v54  ;;  %v1120_v54 = vld [vmem:[#allocation8 + $0xc8] sm:$0xff]  ;;  %v1322_v55 = vld [vmem:[#allocation7 + $0x250] sm:$0xff] }
 0x1a0   : > { %v693_v58 = vpop.f32.mrb[0].mxu0 }
 0x1a1   : > { %v4566_v60 = vadd.f32 %v693_v58, %v507_v49  ;;  %v2837_v61 = vpop.f32.mrb[1].mxu0  ;;  %v789_v49 = vld [vmem:[#allocation7 + $0x48] sm:$0xff]  ;;  %v794_v58 = vld [vmem:[#allocation7 + $0x70] sm:$0xff] }
 0x1a2   : > { %v3444_v50 = vpack.c.bf16 %v789_v49, %v788_v48  ;;  %v3453_v61 = vpack.c.bf16 %v795_v59, %v794_v58  ;;  %v3491_v48 = vpack.c.bf16 %v1118_v45, %v1117_v44  ;;  %v1323_v58 = vld [vmem:[#allocation7 + $0x258] sm:$0xff] }
 0x1a3   : > { %v710_v62 = vmax.f32 %v4566_v60, 0.0  ;;  %v3559_v59 = vpack.c.bf16 %v1323_v58, %v1322_v55 }
 0x1a4   : > { %v698_v63 = vpop.f32.mrb[2].mxu0 }
 0x1a5   : > { %v728_v5 = vsel %vm713_vm3, %v710_v62, 0.0  ;;  %v3776_v6 = vadd.f32 %v698_v63, %v512_v51  ;;  %v2840_v7 = vpop.f32.mrb[3].mxu0  ;;  %v790_v51 = vld [vmem:[#allocation7 + $0x50] sm:$0xff]  ;;  %v985_v63 = vld [vmem:[#allocation7 + $0x100] sm:$0xff] }
 0x1a6   : > { %747 = vst [vmem:[%s4578_s11 - $0x3] sm:$0xf8] %v728_v5  ;;  %vm750_vm4 = vcmp.ne.f32.partialorder %v728_v5, 0.0  ;;  %v816_v11 = vrot.slane %v728_v5, 1  ;;  %v1001_v12 = vrot.slane %v728_v5, 2  ;;  %v1212_v22 = vrot.slane %v728_v5, 3 }
 0x1a7   : > { %v4581_v8 = vmax.f32 %v3776_v6, 0.0  ;;  %v2406_v10 = vsel %vm750_vm4, 1.0, %v4207_v1  ;;  %v3456_v4 = vpack.c.bf16 %v986_v3, %v985_v63  ;;  %v987_v5 = vld [vmem:[#allocation7 + $0x110] sm:$0xff]  ;;  %v988_v6 = vld [vmem:[#allocation7 + $0x118] sm:$0xff]  ;;  %v1324_v3 = vld [vmem:[#allocation7 + $0x260] sm:$0xff] }
 0x1a8   : > { %v703_v13 = vpop.f32.mrb[4].mxu0  ;;  %v763_v21 = vrot.slane %v2406_v10, 3  ;;  %v3459_v7 = vpack.c.bf16 %v988_v6, %v987_v5  ;;  %v990_v10 = vld [vmem:[#allocation7 + $0x128] sm:$0xff]  ;;  %v1122_v63 = vld [vmem:[#allocation8 + $0xd8] sm:$0xff] }
 0x1a9   : > { %748 = vst [vmem:[%s4578_s11 + $0x5] sm:$0xff] %v4581_v8  ;;  %v4587_v14 = vadd.f32 %v703_v13, %v517_v53  ;;  %v2843_v15 = vpop.f32.mrb[5].mxu0  ;;  %v817_v16 = vrot.slane %v4581_v8, 1  ;;  %vm751_vm7 = vcmp.ne.f32.partialorder %v4581_v8, 0.0  ;;  %v1002_v17 = vrot.slane %v4581_v8, 2  ;;  %v994_v13 = vld [vmem:[#allocation7 + $0x148] sm:$0xff] }
 0x1aa   : > { %v2407_v20 = vsel %vm751_vm7, 1.0, %v4207_v1  ;;  %v1213_v23 = vrot.slane %v4581_v8, 3  ;;  %v3447_v53 = vpack.c.bf16 %v791_v52, %v790_v51  ;;  %v1321_v51 = vld [vmem:[#allocation7 + $0x248] sm:$0xff] }
 0x1ab   : > { %v712_v24 = vmax.f32 %v4587_v14, 0.0  ;;  %v818_v25 = vsel %vm432_vm1, %v816_v11, %v817_v16  ;;  %v764_v26 = vrot.slane %v2407_v20, 3  ;;  %v4597_v27 = vsel %vm618_vm2, %v1001_v12, %v1002_v17  ;;  %v992_v11 = vld [vmem:[#allocation7 + $0x138] sm:$0xff]  ;;  %v993_v12 = vld [vmem:[#allocation7 + $0x140] sm:$0xff]  ;;  %v1325_v6 = vld [vmem:[#allocation7 + $0x268] sm:$0xff] }
 0x1ac   : > { %2877 = vmatmul.mubr.f32.vlgmr.msra.gmra.mrb[6].mxu1 %v818_v25  ;;  %v4600_v28 = vsel %vm762_vm6, %v1212_v22, %v1213_v23  ;;  %v3468_v15 = vpack.c.bf16 %v994_v13, %v993_v12  ;;  %v3474_v20 = vpack.c.bf16 %v998_v19, %v997_v18  ;;  %v1000_v22 = vld [vmem:[#allocation7 + $0x178] sm:$0xff]  ;;  %v1313_v25 = vld [vmem:[#allocation7 + $0x208] sm:$0xff] }
 0x1ad   : > { %v4606_v29 = vsel %vm718_vm5, %v712_v24, 0.0  ;;  %3433 = vmatpush3.bf16.msra.mxu1 %v3432_v9  ;;  %2879 = vmatprep.mubr.msk.f32.mxu1 %vm4206_vm0, %v4207_v1  ;;  %v765_v31 = vsel %vm762_vm6, %v763_v21, %v764_v26  ;;  %v989_v9 = vld [vmem:[#allocation7 + $0x120] sm:$0xff]  ;;  %v999_v21 = vld [vmem:[#allocation7 + $0x170] sm:$0xff]  ;;  %v1327_v12 = vld [vmem:[#allocation7 + $0x278] sm:$0xff] }
 0x1ae   : > { %749 = vst [vmem:[%s4578_s11 + $0xd] sm:$0x7] %v4606_v29  ;;  %3434 = vmatprep.subr.bf16.mxu1 %v4205_v0  ;;  %v819_v32 = vrot.slane %v4606_v29, 1  ;;  %vm752_vm8 = vcmp.ne.f32.partialorder %v4606_v29, 0.0  ;;  %v1004_v35 = vrot.slane %v4606_v29, 2  ;;  %v1215_v36 = vrot.slane %v4606_v29, 3 }
 0x1af   : > { %v2408_v37 = vsel %vm752_vm8, 1.0, %v4207_v1  ;;  %v3462_v60 = vpack.c.bf16 %v990_v10, %v989_v9  ;;  %v1316_v29 = vld [vmem:[#allocation7 + $0x220] sm:$0xff]  ;;  %v3562_v9 = vpack.c.bf16 %v1325_v6, %v1324_v3  ;;  %s4051_s11 = sshll.u32 %s4208_s30, 4  ;;  %s4052_s11 = int_to_ptr.vmem [resolvable:$false] %s4051_s11 }
 0x1b0   : > { %v820_v38 = vsel %vm432_vm1, %v817_v16, %v819_v32  ;;  %v766_v39 = vrot.slane %v2408_v37, 3  ;;  %v4623_v40 = vsel %vm618_vm2, %v1002_v17, %v1004_v35  ;;  %v4626_v41 = vsel %vm762_vm6, %v1213_v23, %v1215_v36  ;;  %v995_v16 = vld [vmem:[#allocation7 + $0x150] sm:$0xff]  ;;  %v996_v17 = vld [vmem:[#allocation7 + $0x158] sm:$0xff]  ;;  %s4053_s23 = scalar_lea.vmem %s4052_s11, 512  ;;  %p4054_p0 = scmp.lt.s32.totalorder %s4793_s10, %s4052_s11 }
 0x1b1   : > { %3436 = vmatpush3.bf16.msra.mxu1 %v3435_v30  ;;  %v3471_v14 = vpack.c.bf16 %v996_v17, %v995_v16  ;;  %v3477_v23 = vpack.c.bf16 %v1000_v22, %v999_v21  ;;  %v1114_v36 = vld [vmem:[#allocation8 + $0x98] sm:$0xff]  ;;  %v1125_v17 = vld [vmem:[#allocation8 + $0xf0] sm:$0xff]  ;;  %v731_v21 = vld [vmem:[#allocation8] sm:$0xff]  ;;  %p4055_p2 = scmp.lt.s32.totalorder %s4053_s23, %s4047_s8 }
 0x1b2   : > { %2880 = vmatmul.mubr.f32.gmra.mrb[8].mxu1 %v820_v38  ;;  %3437 = vmatprep.subr.bf16.mxu1 %v4205_v0  ;;  %v767_v43 = vsel %vm762_vm6, %v764_v26, %v766_v39  ;;  %v1111_v26 = vld [vmem:[#allocation8 + $0x80] sm:$0xff]  ;;  %v3483_v38 = vpack.c.bf16 %v1114_v36, %v1113_v34  ;;  %v732_v22 = vld [vmem:[#allocation8 + $0x8] sm:$0xff] }
 0x1b3   : > { %2882 = vmatprep.mubr.msk.f32.mxu1 %vm4206_vm0, %v4207_v1  ;;  %v770_v46 = vadd.f32 %v767_v43, %v765_v31  ;;  %v1112_v31 = vld [vmem:[#allocation8 + $0x88] sm:$0xff]  ;;  %v1115_v39 = vld [vmem:[#allocation8 + $0xa0] sm:$0xff]  ;;  %p4056_p4 = por %p4055_p2, %p4054_p0 }
 0x1b4   : > { %v3479_v33 = vpack.c.bf16 %v1112_v31, %v1111_v26  ;;  %v1295_v34 = vld [vmem:[#allocation7 + $0x180] sm:$0xff]  ;;  %v1296_v36 = vld [vmem:[#allocation7 + $0x188] sm:$0xff] }
 0x1b5   : > { %3439 = vmatpush3.bf16.msra.mxu1 %v3438_v42  ;;  %771 = vadd.xlane.f32.xlu0 %v770_v46  ;;  %v1318_v46 = vld [vmem:[#allocation7 + $0x230] sm:$0xff]  ;;  %p4057_p8 = pnand %p4056_p4, %p4050_p9 }
 0x1b6   : > { %2883 = vmatmul.mubr.f32.gmra.mrb[10].mxu1 %v819_v32  ;;  %3440 = vmatprep.subr.bf16.mxu1 %v4205_v0  ;;  %v1315_v32 = vld [vmem:[#allocation7 + $0x218] sm:$0xff] }
 0x1b7   : > { %2917 = vmatprep.mubr.msk.f32.mxu1 %vm4206_vm0, %v4207_v1  ;;  %3480 = vmatprep.subr.bf16.mxu0 %v3479_v33 }
 0x1b8   : > { %3482 = vmatpush3.bf16.msra.mxu0 %v3479_v33 }
 0x1b9   : > { %3442 = vmatpush3.bf16.msra.mxu1 %v3441_v47  ;;  %3484 = vmatprep.subr.bf16.mxu0 %v3483_v38  ;;  %v1319_v47 = vld [vmem:[#allocation7 + $0x238] sm:$0xff] }
 0x1ba   : > { %3443 = vmatprep.subr.bf16.mxu1 %v4205_v0  ;;  %v3553_v49 = vpack.c.bf16 %v1319_v47, %v1318_v46 }
 0x1bc   : > { %3486 = vmatpush3.bf16.msra.mxu0 %v3483_v38 }
 0x1bd   : > { %3445 = vmatpush3.bf16.msra.mxu1 %v3444_v50  ;;  %v1320_v50 = vld [vmem:[#allocation7 + $0x240] sm:$0xff] }
 0x1be   : > { %3446 = vmatprep.subr.bf16.mxu1 %v4205_v0  ;;  %v3556_v52 = vpack.c.bf16 %v1321_v51, %v1320_v50  ;;  %v1297_v50 = vld [vmem:[#allocation7 + $0x190] sm:$0xff]  ;;  %v1298_v51 = vld [vmem:[#allocation7 + $0x198] sm:$0xff] }
 0x1bf   : > { %v3571_v58 = vpack.c.bf16 %v1298_v51, %v1297_v50  ;;  %v1509_v50 = vld [vmem:[#allocation7 + $0x2a0] sm:$0xff]  ;;  %v1510_v51 = vld [vmem:[#allocation7 + $0x2a8] sm:$0xff] }
 0x1c1   : > { %3448 = vmatpush3.bf16.msra.mxu1 %v3447_v53  ;;  %v1119_v53 = vld [vmem:[#allocation8 + $0xc0] sm:$0xff] }
 0x1c2   : > { %3449 = vmatprep.subr.bf16.mxu1 %v4205_v0 }
 0x1c5   : > { %3451 = vmatpush3.bf16.msra.mxu1 %v3450_v56  ;;  %v3495_v56 = vpack.c.bf16 %v1120_v54, %v1119_v53 }
 0x1c6   : > { %3452 = vmatprep.subr.bf16.mxu1 %v4205_v0 }
 0x1c9   : > { %3454 = vmatpush3.bf16.msra.mxu1 %v3453_v61  ;;  %v1121_v61 = vld [vmem:[#allocation8 + $0xd0] sm:$0xff] }
 0x1ca   : > { %3455 = vmatprep.subr.bf16.mxu1 %v4205_v0  ;;  %v3499_v5 = vpack.c.bf16 %v1122_v63, %v1121_v61  ;;  %v734_v61 = vld [vmem:[#allocation8 + $0x18] sm:$0xff] }
 0x1cc   : > { %2918 = vmatmul.mubr.msk.f32.vlgmr.msra.gmra.mrb[6].mxu1 %vm713_vm3, %v710_v62  ;;  %v991_v62 = vld [vmem:[#allocation7 + $0x130] sm:$0xff] }
 0x1cd   : > { %3457 = vmatpush3.bf16.msra.mxu1 %v3456_v4  ;;  %2920 = vmatprep.mubr.msk.f32.mxu1 %vm4206_vm0, %v4207_v1 }
 0x1ce   : > { %3458 = vmatprep.subr.bf16.mxu1 %v4205_v0 }
 0x1d0   : > { %2921 = vmatmul.mubr.f32.gmra.mrb[8].mxu1 %v4581_v8  ;;  %v3465_v8 = vpack.c.bf16 %v992_v11, %v991_v62  ;;  %v1124_v62 = vld [vmem:[#allocation8 + $0xe8] sm:$0xff]  ;;  %v1326_v11 = vld [vmem:[#allocation7 + $0x270] sm:$0xff] }
 0x1d1   : > { %3460 = vmatpush3.bf16.msra.mxu1 %v3459_v7  ;;  %2923 = vmatprep.mubr.msk.f32.mxu1 %vm4206_vm0, %v4207_v1 }
 0x1d2   : > { %3461 = vmatprep.subr.bf16.mxu1 %v4205_v0 }
 0x1d4   : > { %2924 = vmatmul.mubr.msk.f32.gmra.mrb[10].mxu1 %vm718_vm5, %v712_v24  ;;  %v1312_v24 = vld [vmem:[#allocation7 + $0x200] sm:$0xff] }
 0x1d5   : > { %3463 = vmatpush3.bf16.msra.mxu1 %v3462_v60  ;;  %2958 = vmatprep.mubr.msk.f32.mxu1 %vm4206_vm0, %v4207_v1  ;;  %v3544_v30 = vpack.c.bf16 %v1313_v25, %v1312_v24  ;;  %v1123_v60 = vld [vmem:[#allocation8 + $0xe0] sm:$0xff] }
 0x1d6   : > { %3464 = vmatprep.subr.bf16.mxu1 %v4205_v0 }
 0x1d9   : > { %3466 = vmatpush3.bf16.msra.mxu1 %v3465_v8  ;;  %v3503_v8 = vpack.c.bf16 %v1124_v62, %v1123_v60  ;;  %v735_v60 = vld [vmem:[#allocation8 + $0x20] sm:$0xff]  ;;  %v736_v62 = vld [vmem:[#allocation8 + $0x28] sm:$0xff] }
 0x1da   : > { %3467 = vmatprep.subr.bf16.mxu1 %v4205_v0 }
 0x1dd   : > { %3469 = vmatpush3.bf16.msra.mxu1 %v3468_v15  ;;  %v3565_v15 = vpack.c.bf16 %v1327_v12, %v1326_v11  ;;  %v1301_v12 = vld [vmem:[#allocation7 + $0x1b0] sm:$0xff] }
 0x1de   : > { %3470 = vmatprep.subr.bf16.mxu1 %v4205_v0 }
 0x1e1   : > { %3472 = vmatpush3.bf16.msra.mxu1 %v3471_v14  ;;  %v1126_v14 = vld [vmem:[#allocation8 + $0xf8] sm:$0xff] }
 0x1e2   : > { %3473 = vmatprep.subr.bf16.mxu1 %v4205_v0  ;;  %v3507_v18 = vpack.c.bf16 %v1126_v14, %v1125_v17  ;;  %v738_v17 = vld [vmem:[#allocation8 + $0x38] sm:$0xff] }
 0x1e5   : > { %3475 = vmatpush3.bf16.msra.mxu1 %v3474_v20 }
 0x1e6   : > { %3476 = vmatprep.subr.bf16.mxu1 %v4205_v0 }
 0x1e9   : > { %3478 = vmatpush3.bf16.msra.mxu1 %v3477_v23  ;;  %v3511_v23 = vpack.c.bf16 %v732_v22, %v731_v21  ;;  %v740_v21 = vld [vmem:[#allocation8 + $0x48] sm:$0xff] }
 0x1ea   : > { %3543 = vmatprep.subr.bf16.mxu1 %v4205_v0 }
 0x1ec   : > { %2959 = vmatmul.mubr.f32.vlgmr.msra.gmra.mrb[6].mxu1 %v4597_v27  ;;  %v1314_v27 = vld [vmem:[#allocation7 + $0x210] sm:$0xff] }
 0x1ed   : > { %2961 = vmatprep.mubr.msk.f32.mxu1 %vm4206_vm0, %v4207_v1  ;;  %3545 = vmatpush3.bf16.msra.mxu1 %v3544_v30  ;;  %v3547_v37 = vpack.c.bf16 %v1315_v32, %v1314_v27 }
 0x1ee   : > { %3546 = vmatprep.subr.bf16.mxu1 %v4205_v0 }
 0x1f0   : > { %2962 = vmatmul.mubr.f32.gmra.mrb[8].mxu1 %v4623_v40  ;;  %v1116_v40 = vld [vmem:[#allocation8 + $0xa8] sm:$0xff] }
 0x1f1   : > { %2964 = vmatprep.mubr.msk.f32.mxu1 %vm4206_vm0, %v4207_v1  ;;  %v3487_v42 = vpack.c.bf16 %v1116_v40, %v1115_v39  ;;  %3548 = vmatpush3.bf16.msra.mxu1 %v3547_v37  ;;  %v3568_v40 = vpack.c.bf16 %v1296_v36, %v1295_v34  ;;  %v743_v34 = vld [vmem:[#allocation8 + $0x60] sm:$0xff]  ;;  %v744_v36 = vld [vmem:[#allocation8 + $0x68] sm:$0xff] }
 0x1f2   : > { %3549 = vmatprep.subr.bf16.mxu1 %v4205_v0 }
 0x1f3   : > { %3488 = vmatprep.subr.bf16.mxu0 %v3487_v42 }
 0x1f4   : > { %2965 = vmatmul.mubr.f32.gmra.mrb[10].mxu1 %v1004_v35  ;;  %v1317_v35 = vld [vmem:[#allocation7 + $0x228] sm:$0xff]  ;;  %3490 = vmatpush3.bf16.msra.mxu0 %v3487_v42 }
 0x1f5   : > { %3069 = vmatprep.mubr.msk.f32.mxu1 %vm4206_vm0, %v4207_v1  ;;  %v3550_v43 = vpack.c.bf16 %v1317_v35, %v1316_v29  ;;  %3492 = vmatprep.subr.bf16.mxu0 %v3491_v48 }
 0x1f7   : > { %3551 = vmatpush3.bf16.msra.mxu1 %v3550_v43 }
 0x1f8   : > { %3552 = vmatprep.subr.bf16.mxu1 %v4205_v0  ;;  %3494 = vmatpush3.bf16.msra.mxu0 %v3491_v48 }
 0x1f9   : > { %3496 = vmatprep.subr.bf16.mxu0 %v3495_v56 }
 0x1fb   : > { %3554 = vmatpush3.bf16.msra.mxu1 %v3553_v49 }
 0x1fc   : > { %3555 = vmatprep.subr.bf16.mxu1 %v4205_v0  ;;  %3498 = vmatpush3.bf16.msra.mxu0 %v3495_v56 }
 0x1fd   : > { %3500 = vmatprep.subr.bf16.mxu0 %v3499_v5 }
 0x1ff   : > { %3557 = vmatpush3.bf16.msra.mxu1 %v3556_v52 }
 0x200   : > { %3558 = vmatprep.subr.bf16.mxu1 %v4205_v0  ;;  %3502 = vmatpush3.bf16.msra.mxu0 %v3499_v5  ;;  %v1300_v5 = vld [vmem:[#allocation7 + $0x1a8] sm:$0xff] }
 0x201   : > { %3504 = vmatprep.subr.bf16.mxu0 %v3503_v8 }
 0x203   : > { %3560 = vmatpush3.bf16.msra.mxu1 %v3559_v59  ;;  %v733_v59 = vld [vmem:[#allocation8 + $0x10] sm:$0xff] }
 0x204   : > { %3561 = vmatprep.subr.bf16.mxu1 %v4205_v0  ;;  %3506 = vmatpush3.bf16.msra.mxu0 %v3503_v8 }
 0x205   : > { %3508 = vmatprep.subr.bf16.mxu0 %v3507_v18 }
 0x207   : > { %3563 = vmatpush3.bf16.msra.mxu1 %v3562_v9 }
 0x208   : > { %3564 = vmatprep.subr.bf16.mxu1 %v4205_v0  ;;  %3510 = vmatpush3.bf16.msra.mxu0 %v3507_v18  ;;  %v1303_v18 = vld [vmem:[#allocation7 + $0x1c0] sm:$0xff] }
 0x209   : > { %3512 = vmatprep.subr.bf16.mxu0 %v3511_v23 }
 0x20b   : > { %3566 = vmatpush3.bf16.msra.mxu1 %v3565_v15  ;;  %v3519_v15 = vpack.c.bf16 %v736_v62, %v735_v60  ;;  %v1519_v60 = vld [vmem:[#allocation7 + $0x2f0] sm:$0xff]  ;;  %v1520_v62 = vld [vmem:[#allocation7 + $0x2f8] sm:$0xff] }
 0x20c   : > { %3567 = vmatprep.subr.bf16.mxu1 %v4205_v0 }
 0x242   : > { %v772_v4 = vpop.xlane.xlu0 %771 }
 0x243   : > { %v773_v7 = vrot.slane %v772_v4, 4 }
 0x245   : > { %v774_v10 = vadd.f32 %v773_v7, %v772_v4  ;;  %v1299_v4 = vld [vmem:[#allocation7 + $0x1a0] sm:$0xff] }
 0x246   : > { %v3574_v8 = vpack.c.bf16 %v1300_v5, %v1299_v4  ;;  %v1516_v4 = vld [vmem:[#allocation7 + $0x2d8] sm:$0xff] }
 0x247   : > { %v775_v13 = vrot.slane %v774_v10, 2 }
 0x249   : > { %v776_v16 = vadd.f32 %v775_v13, %v774_v10  ;;  %v3515_v10 = vpack.c.bf16 %v734_v61, %v733_v59  ;;  %v1302_v13 = vld [vmem:[#allocation7 + $0x1b8] sm:$0xff]  ;;  %v1514_v59 = vld [vmem:[#allocation7 + $0x2c8] sm:$0xff] }
 0x24a   : > { %v3577_v14 = vpack.c.bf16 %v1302_v13, %v1301_v12  ;;  %v1746_v12 = vld [vmem:[#allocation7 + $0x388] sm:$0xff]  ;;  %v1624_v13 = vld [vmem:[#allocation8 + $0x100] sm:$0xff] }
 0x24b   : > { %v777_v19 = vrot.slane %v776_v16, 1 }
 0x24d   : > { %v778_v20 = vadd.f32 %v777_v19, %v776_v16  ;;  %v737_v16 = vld [vmem:[#allocation8 + $0x30] sm:$0xff]  ;;  %v1304_v19 = vld [vmem:[#allocation7 + $0x1c8] sm:$0xff] }
 0x24e   : > { %v3580_v22 = vpack.c.bf16 %v1304_v19, %v1303_v18  ;;  %v1626_v18 = vld [vmem:[#allocation8 + $0x110] sm:$0xff]  ;;  %v1627_v19 = vld [vmem:[#allocation8 + $0x118] sm:$0xff] }
 0x24f   : > { %3821 = vpush %v778_v20  ;;  %v3523_v20 = vpack.c.bf16 %v738_v17, %v737_v16  ;;  %v1625_v16 = vld [vmem:[#allocation8 + $0x108] sm:$0xff]  ;;  %v1748_v17 = vld [vmem:[#allocation7 + $0x398] sm:$0xff] }
 0x280   : > { %s3822_s5 = spop %3821 }
 0x281   : > { %v2150_v24 = vstv %s3822_s5 }
 0x282   : > { %2151 = vst [vmem:[%s4651_s13] sm:$0x1] %v2150_v24  ;;  %v1306_v24 = vld [vmem:[#allocation7 + $0x1d8] sm:$0xff] }
 0x2bf   : > { %v1075_v25 = vpop.f32.mrb[6].mxu1 }
 0x2c0   : > { %v1092_v26 = vmax.f32 %v1075_v25, 0.0  ;;  %v2960_v30 = vpop.f32.mrb[7].mxu1 }
 0x2c1   : > { %v742_v30 = vld [vmem:[#allocation8 + $0x58] sm:$0xff] }
 0x2c2   : > { %v1099_v31 = vrot.slane %v1092_v26, 7  ;;  %v741_v26 = vld [vmem:[#allocation8 + $0x50] sm:$0xff] }
 0x2c3   : > { %v1080_v27 = vpop.f32.mrb[8].mxu1 }
 0x2c4   : > { %v1093_v32 = vmax.f32 %v1080_v27, 0.0  ;;  %v2963_v33 = vpop.f32.mrb[9].mxu1  ;;  %v1107_v37 = vsel %vm713_vm3, %v1099_v31, 0.0  ;;  %v1307_v27 = vld [vmem:[#allocation7 + $0x1e0] sm:$0xff] }
 0x2c5   : > { %v1130_v29 = vrot.slane %v1107_v37, 3  ;;  %v1328_v35 = vrot.slane %v1107_v37, 2  ;;  %v1416_v45 = vrot.slane %v1107_v37, 1  ;;  %v3531_v33 = vpack.c.bf16 %v742_v30, %v741_v26 }
 0x2c6   : > { %v1100_v38 = vrot.slane %v1093_v32, 7  ;;  %v1308_v32 = vld [vmem:[#allocation7 + $0x1e8] sm:$0xff] }
 0x2c7   : > { %v1085_v39 = vpop.f32.mrb[10].mxu1  ;;  %v3586_v37 = vpack.c.bf16 %v1308_v32, %v1307_v27  ;;  %v1754_v27 = vld [vmem:[#allocation7 + $0x3c8] sm:$0xff] }
 0x2c8   : > { %v1101_v42 = vsel %vm1098_vm9, %v1099_v31, %v1100_v38  ;;  %v1094_v43 = vmax.f32 %v1085_v39, 0.0  ;;  %v2966_v44 = vpop.f32.mrb[11].mxu1  ;;  %v1310_v39 = vld [vmem:[#allocation7 + $0x1f8] sm:$0xff] }
 0x2c9   : > { %v1329_v46 = vrot.slane %v1101_v42, 2  ;;  %v1417_v47 = vrot.slane %v1101_v42, 1  ;;  %v1131_v48 = vrot.slane %v1101_v42, 3  ;;  %v1506_v44 = vld [vmem:[#allocation7 + $0x288] sm:$0xff] }
 0x2ca   : > { %v1102_v49 = vrot.slane %v1094_v43, 7  ;;  %v1505_v43 = vld [vmem:[#allocation7 + $0x280] sm:$0xff] }
 0x2cb   : > { %v4691_v52 = vsel %vm762_vm6, %v1130_v29, %v1131_v48  ;;  %v1330_v53 = vsel %vm618_vm2, %v1328_v35, %v1329_v46  ;;  %v4695_v54 = vsel %vm432_vm1, %v1416_v45, %v1417_v47  ;;  %v745_v29 = vld [vmem:[#allocation8 + $0x70] sm:$0xff]  ;;  %v746_v35 = vld [vmem:[#allocation8 + $0x78] sm:$0xff] }
 0x2cc   : > { %v1103_v55 = vsel %vm1098_vm9, %v1100_v38, %v1102_v49  ;;  %2999 = vmatprep.mubr.f32.mxu0 %v4691_v52  ;;  %3070 = vmatmul.mubr.f32.vlgmr.msra.gmra.mrb[12].mxu1 %v1330_v53  ;;  %v1309_v38 = vld [vmem:[#allocation7 + $0x1f0] sm:$0xff]  ;;  %v3539_v45 = vpack.c.bf16 %v746_v35, %v745_v29  ;;  %v3598_v53 = vpack.c.bf16 %v1510_v51, %v1509_v50  ;;  %v1635_v29 = vld [vmem:[#allocation8 + $0x158] sm:$0xff] }
 0x2cd   : > { %v4701_v56 = vsel %vm718_vm5, %v1103_v55, 0.0  ;;  %3569 = vmatpush3.bf16.msra.mxu1 %v3568_v40  ;;  %3072 = vmatprep.mubr.msk.f32.mxu1 %vm4206_vm0, %v4207_v1  ;;  %v3535_v40 = vpack.c.bf16 %v744_v36, %v743_v34  ;;  %v3589_v42 = vpack.c.bf16 %v1310_v39, %v1309_v38  ;;  %v1512_v55 = vld [vmem:[#allocation7 + $0x2b8] sm:$0xff]  ;;  %v1633_v34 = vld [vmem:[#allocation8 + $0x148] sm:$0xff]  ;;  %v1638_v51 = vld [vmem:[#allocation8 + $0x170] sm:$0xff] }
 0x2ce   : > { %v1133_v63 = vrot.slane %v4701_v56, 3  ;;  %3570 = vmatprep.subr.bf16.mxu1 %v4205_v0  ;;  %v1331_v3 = vrot.slane %v4701_v56, 2  ;;  %v1419_v6 = vrot.slane %v4701_v56, 1  ;;  %v1756_v38 = vld [vmem:[#allocation7 + $0x3d8] sm:$0xff] }
 0x2d0   : > { %v4712_v7 = vsel %vm762_vm6, %v1131_v48, %v1133_v63  ;;  %v1332_v9 = vsel %vm618_vm2, %v1329_v46, %v1331_v3  ;;  %v4718_v11 = vsel %vm432_vm1, %v1417_v47, %v1419_v6  ;;  %v3592_v46 = vpack.c.bf16 %v1506_v44, %v1505_v43  ;;  %v1507_v47 = vld [vmem:[#allocation7 + $0x290] sm:$0xff]  ;;  %v1508_v48 = vld [vmem:[#allocation7 + $0x298] sm:$0xff]  ;;  %v1758_v43 = vld [vmem:[#allocation7 + $0x3e8] sm:$0xff] }
 0x2d1   : > { %3572 = vmatpush3.bf16.msra.mxu1 %v3571_v58  ;;  %3000 = vmatmul.mubr.f32.vlgmr.msra.gmra.mrb[6].mxu0 %v4712_v7  ;;  %v3595_v49 = vpack.c.bf16 %v1508_v48, %v1507_v47  ;;  %v1759_v48 = vld [vmem:[#allocation7 + $0x3f0] sm:$0xff] }
 0x2d2   : > { %3514 = vmatpush3.bf16.msra.mxu0 %v3511_v23  ;;  %3073 = vmatmul.mubr.f32.gmra.mrb[14].mxu1 %v1332_v9  ;;  %v1305_v23 = vld [vmem:[#allocation7 + $0x1d0] sm:$0xff]  ;;  %v1518_v9 = vld [vmem:[#allocation7 + $0x2e8] sm:$0xff] }
 0x2d3   : > { %3034 = vmatprep.mubr.f32.mxu0 %v4600_v28  ;;  %3573 = vmatprep.subr.bf16.mxu1 %v4205_v0  ;;  %v739_v28 = vld [vmem:[#allocation8 + $0x40] sm:$0xff]  ;;  %v3583_v31 = vpack.c.bf16 %v1306_v24, %v1305_v23  ;;  %v1752_v23 = vld [vmem:[#allocation7 + $0x3b8] sm:$0xff]  ;;  %v1630_v24 = vld [vmem:[#allocation8 + $0x130] sm:$0xff] }
 0x2d4   : > { %3516 = vmatprep.subr.bf16.mxu0 %v3515_v10  ;;  %3075 = vmatprep.mubr.msk.f32.mxu1 %vm4206_vm0, %v4207_v1  ;;  %v3527_v25 = vpack.c.bf16 %v740_v21, %v739_v28  ;;  %v1750_v28 = vld [vmem:[#allocation7 + $0x3a8] sm:$0xff]  ;;  %v1628_v21 = vld [vmem:[#allocation8 + $0x120] sm:$0xff] }
 0x2d5   : > { %3575 = vmatpush3.bf16.msra.mxu1 %v3574_v8  ;;  %v1745_v8 = vld [vmem:[#allocation7 + $0x380] sm:$0xff] }
 0x2d6   : > { %3518 = vmatpush3.bf16.msra.mxu0 %v3515_v10  ;;  %3076 = vmatmul.mubr.f32.gmra.mrb[16].mxu1 %v1331_v3  ;;  %v1515_v3 = vld [vmem:[#allocation7 + $0x2d0] sm:$0xff] }
 0x2d7   : > { %3576 = vmatprep.subr.bf16.mxu1 %v4205_v0  ;;  %3520 = vmatprep.subr.bf16.mxu0 %v3519_v15  ;;  %v3607_v5 = vpack.c.bf16 %v1516_v4, %v1515_v3 }
 0x2d8   : > { %3110 = vmatprep.mubr.msk.f32.mxu1 %vm4206_vm0, %v4207_v1 }
 0x2d9   : > { %3578 = vmatpush3.bf16.msra.mxu1 %v3577_v14  ;;  %v3615_v14 = vpack.c.bf16 %v1625_v16, %v1624_v13 }
 0x2da   : > { %3522 = vmatpush3.bf16.msra.mxu0 %v3519_v15  ;;  %3579 = vmatprep.subr.bf16.mxu1 %v4205_v0  ;;  %v3647_v15 = vpack.c.bf16 %v1746_v12, %v1745_v8 }
 0x2db   : > { %3524 = vmatprep.subr.bf16.mxu0 %v3523_v20 }
 0x2dd   : > { %3581 = vmatpush3.bf16.msra.mxu1 %v3580_v22  ;;  %v1751_v22 = vld [vmem:[#allocation7 + $0x3b0] sm:$0xff] }
 0x2de   : > { %3526 = vmatpush3.bf16.msra.mxu0 %v3523_v20  ;;  %3582 = vmatprep.subr.bf16.mxu1 %v4205_v0  ;;  %v1749_v20 = vld [vmem:[#allocation7 + $0x3a0] sm:$0xff]  ;;  %v3659_v26 = vpack.c.bf16 %v1752_v23, %v1751_v22 }
 0x2df   : > { %3528 = vmatprep.subr.bf16.mxu0 %v3527_v25  ;;  %v3655_v56 = vpack.c.bf16 %v1750_v28, %v1749_v20 }
 0x2e1   : > { %3584 = vmatpush3.bf16.msra.mxu1 %v3583_v31  ;;  %v1753_v31 = vld [vmem:[#allocation7 + $0x3c0] sm:$0xff] }
 0x2e2   : > { %3530 = vmatpush3.bf16.msra.mxu0 %v3527_v25  ;;  %3585 = vmatprep.subr.bf16.mxu1 %v4205_v0  ;;  %v1631_v25 = vld [vmem:[#allocation8 + $0x138] sm:$0xff]  ;;  %v3663_v32 = vpack.c.bf16 %v1754_v27, %v1753_v31  ;;  %v1733_v31 = vld [vmem:[#allocation7 + $0x328] sm:$0xff] }
 0x2e3   : > { %3532 = vmatprep.subr.bf16.mxu0 %v3531_v33  ;;  %v3627_v30 = vpack.c.bf16 %v1631_v25, %v1630_v24 }
 0x2e5   : > { %3587 = vmatpush3.bf16.msra.mxu1 %v3586_v37  ;;  %v1755_v37 = vld [vmem:[#allocation7 + $0x3d0] sm:$0xff] }
 0x2e6   : > { %3534 = vmatpush3.bf16.msra.mxu0 %v3531_v33  ;;  %3588 = vmatprep.subr.bf16.mxu1 %v4205_v0  ;;  %v1632_v33 = vld [vmem:[#allocation8 + $0x140] sm:$0xff]  ;;  %v3667_v39 = vpack.c.bf16 %v1756_v38, %v1755_v37 }
 0x2e7   : > { %3536 = vmatprep.subr.bf16.mxu0 %v3535_v40  ;;  %v3631_v36 = vpack.c.bf16 %v1633_v34, %v1632_v33  ;;  %v1734_v34 = vld [vmem:[#allocation7 + $0x330] sm:$0xff]  ;;  %v1736_v38 = vld [vmem:[#allocation7 + $0x340] sm:$0xff] }
 0x2e9   : > { %3590 = vmatpush3.bf16.msra.mxu1 %v3589_v42  ;;  %v1757_v42 = vld [vmem:[#allocation7 + $0x3e0] sm:$0xff] }
 0x2ea   : > { %3538 = vmatpush3.bf16.msra.mxu0 %v3535_v40  ;;  %3591 = vmatprep.subr.bf16.mxu1 %v4205_v0  ;;  %v1634_v40 = vld [vmem:[#allocation8 + $0x150] sm:$0xff]  ;;  %v3671_v44 = vpack.c.bf16 %v1758_v43, %v1757_v42  ;;  %v1740_v43 = vld [vmem:[#allocation7 + $0x360] sm:$0xff] }
 0x2eb   : > { %3540 = vmatprep.subr.bf16.mxu0 %v3539_v45  ;;  %v3635_v35 = vpack.c.bf16 %v1635_v29, %v1634_v40  ;;  %v1738_v29 = vld [vmem:[#allocation7 + $0x350] sm:$0xff] }
 0x2ec   : > { %3111 = vmatmul.mubr.f32.vlgmr.msra.gmra.mrb[12].mxu1 %v4695_v54  ;;  %v1511_v54 = vld [vmem:[#allocation7 + $0x2b0] sm:$0xff] }
 0x2ed   : > { %3593 = vmatpush3.bf16.msra.mxu1 %v3592_v46  ;;  %3113 = vmatprep.mubr.msk.f32.mxu1 %vm4206_vm0, %v4207_v1  ;;  %v3601_v58 = vpack.c.bf16 %v1512_v55, %v1511_v54  ;;  %v1637_v46 = vld [vmem:[#allocation8 + $0x168] sm:$0xff]  ;;  %v1728_v55 = vld [vmem:[#allocation7 + $0x300] sm:$0xff] }
 0x2ee   : > { %3542 = vmatpush3.bf16.msra.mxu0 %v3539_v45  ;;  %3594 = vmatprep.subr.bf16.mxu1 %v4205_v0  ;;  %v1636_v45 = vld [vmem:[#allocation8 + $0x160] sm:$0xff] }
 0x2ef   : > { %3648 = vmatprep.subr.bf16.mxu0 %v3647_v15  ;;  %v3639_v47 = vpack.c.bf16 %v1637_v46, %v1636_v45  ;;  %v1742_v46 = vld [vmem:[#allocation7 + $0x370] sm:$0xff] }
 0x2f0   : > { %3114 = vmatmul.mubr.f32.gmra.mrb[14].mxu1 %v4718_v11  ;;  %v3613_v11 = vpack.c.bf16 %v1520_v62, %v1519_v60 }
 0x2f1   : > { %3035 = vmatmul.mubr.f32.vlgmr.msra.gmra.mrb[6].mxu0 %v4626_v41  ;;  %3596 = vmatpush3.bf16.msra.mxu1 %v3595_v49  ;;  %v1513_v41 = vld [vmem:[#allocation7 + $0x2c0] sm:$0xff]  ;;  %v1760_v49 = vld [vmem:[#allocation7 + $0x3f8] sm:$0xff] }
 0x2f2   : > { %3116 = vmatprep.mubr.msk.f32.mxu1 %vm4206_vm0, %v4207_v1  ;;  %3597 = vmatprep.subr.bf16.mxu1 %v4205_v0  ;;  %v3604_v61 = vpack.c.bf16 %v1514_v59, %v1513_v41  ;;  %v3675_v50 = vpack.c.bf16 %v1760_v49, %v1759_v48  ;;  %v1919_v49 = vld [vmem:[#allocation7 + $0x400] sm:$0xff] }
 0x2f3   : > { %3650 = vmatpush3.bf16.msra.mxu0 %v3647_v15 }
 0x2f4   : > { %3117 = vmatmul.mubr.f32.gmra.mrb[16].mxu1 %v1419_v6  ;;  %v1517_v6 = vld [vmem:[#allocation7 + $0x2e0] sm:$0xff] }
 0x2f5   : > { %3599 = vmatpush3.bf16.msra.mxu1 %v3598_v53  ;;  %3151 = vmatprep.mubr.msk.f32.mxu1 %vm4206_vm0, %v4207_v1  ;;  %v3610_v10 = vpack.c.bf16 %v1518_v9, %v1517_v6  ;;  %v1639_v53 = vld [vmem:[#allocation8 + $0x178] sm:$0xff] }
 0x2f6   : > { %3600 = vmatprep.subr.bf16.mxu1 %v4205_v0  ;;  %v3643_v54 = vpack.c.bf16 %v1639_v53, %v1638_v51  ;;  %v1921_v53 = vld [vmem:[#allocation7 + $0x410] sm:$0xff] }
 0x2f9   : > { %3602 = vmatpush3.bf16.msra.mxu1 %v3601_v58  ;;  %v1729_v58 = vld [vmem:[#allocation7 + $0x308] sm:$0xff] }
 0x2fa   : > { %3603 = vmatprep.subr.bf16.mxu1 %v4205_v0  ;;  %v3679_v41 = vpack.c.bf16 %v1729_v58, %v1728_v55  ;;  %v1923_v58 = vld [vmem:[#allocation7 + $0x420] sm:$0xff] }
 0x2fd   : > { %3605 = vmatpush3.bf16.msra.mxu1 %v3604_v61 }
 0x2fe   : > { %3606 = vmatprep.subr.bf16.mxu1 %v4205_v0 }
 0x301   : > { %3608 = vmatpush3.bf16.msra.mxu1 %v3607_v5 }
 0x302   : > { %3609 = vmatprep.subr.bf16.mxu1 %v4205_v0 }
 0x305   : > { %3611 = vmatpush3.bf16.msra.mxu1 %v3610_v10 }
 0x306   : > { %3612 = vmatprep.subr.bf16.mxu1 %v4205_v0  ;;  %v1747_v0 = vld [vmem:[#allocation7 + $0x390] sm:$0xff] }
 0x309   : > { %3614 = vmatpush3.bf16.msra.mxu1 %v3613_v11 }
 0x30a   : > { %3616 = vmatprep.subr.bf16.mxu1 %v3615_v14 }
 0x30c   : > { %3152 = vmatmul.mubr.f32.vlgmr.msra.gmra.mrb[12].mxu1 %v4691_v52  ;;  %v3651_v52 = vpack.c.bf16 %v1748_v17, %v1747_v0 }
 0x30d   : > { %3154 = vmatprep.mubr.msk.f32.mxu1 %vm4206_vm0, %v4207_v1  ;;  %3618 = vmatpush3.bf16.msra.mxu1 %v3615_v14 }
 0x30e   : > { %3652 = vmatprep.subr.bf16.mxu0 %v3651_v52 }
 0x30f   : > { %3654 = vmatpush3.bf16.msra.mxu0 %v3651_v52 }
 0x310   : > { %3155 = vmatmul.mubr.f32.gmra.mrb[14].mxu1 %v4712_v7  ;;  %v3619_v7 = vpack.c.bf16 %v1627_v19, %v1626_v18  ;;  %3656 = vmatprep.subr.bf16.mxu0 %v3655_v56 }
 0x311   : > { %3157 = vmatprep.mubr.msk.f32.mxu1 %vm4206_vm0, %v4207_v1  ;;  %v1629_v1 = vld [vmem:[#allocation8 + $0x128] sm:$0xff] }
 0x312   : > { %3620 = vmatprep.subr.bf16.mxu1 %v3619_v7 }
 0x313   : > { %3622 = vmatpush3.bf16.msra.mxu1 %v3619_v7  ;;  %3658 = vmatpush3.bf16.msra.mxu0 %v3655_v56  ;;  %v1731_v56 = vld [vmem:[#allocation7 + $0x318] sm:$0xff] }
 0x314   : > { %3158 = vmatmul.mubr.f32.gmra.mrb[16].mxu1 %v1133_v63  ;;  %v3623_v63 = vpack.c.bf16 %v1629_v1, %v1628_v21  ;;  %3660 = vmatprep.subr.bf16.mxu0 %v3659_v26  ;;  %v1730_v1 = vld [vmem:[#allocation7 + $0x310] sm:$0xff] }
 0x315   : > { %v3683_v25 = vpack.c.bf16 %v1731_v56, %v1730_v1  ;;  %v2041_v56 = vld [vmem:[#allocation8 + $0x1b0] sm:$0xff] }
 0x316   : > { %3624 = vmatprep.subr.bf16.mxu1 %v3623_v63 }
 0x317   : > { %3626 = vmatpush3.bf16.msra.mxu1 %v3623_v63  ;;  %3662 = vmatpush3.bf16.msra.mxu0 %v3659_v26 }
 0x318   : > { %3628 = vmatprep.subr.bf16.mxu1 %v3627_v30  ;;  %3664 = vmatprep.subr.bf16.mxu0 %v3663_v32 }
 0x31b   : > { %3630 = vmatpush3.bf16.msra.mxu1 %v3627_v30  ;;  %3666 = vmatpush3.bf16.msra.mxu0 %v3663_v32  ;;  %v1732_v30 = vld [vmem:[#allocation7 + $0x320] sm:$0xff] }
 0x31c   : > { %3632 = vmatprep.subr.bf16.mxu1 %v3631_v36  ;;  %3668 = vmatprep.subr.bf16.mxu0 %v3667_v39  ;;  %v3687_v33 = vpack.c.bf16 %v1733_v31, %v1732_v30  ;;  %v2046_v30 = vld [vmem:[#allocation8 + $0x1d8] sm:$0xff] }
 0x31f   : > { %3634 = vmatpush3.bf16.msra.mxu1 %v3631_v36  ;;  %3670 = vmatpush3.bf16.msra.mxu0 %v3667_v39  ;;  %v1735_v36 = vld [vmem:[#allocation7 + $0x338] sm:$0xff]  ;;  %v1737_v39 = vld [vmem:[#allocation7 + $0x348] sm:$0xff] }
 0x320   : > { %3636 = vmatprep.subr.bf16.mxu1 %v3635_v35  ;;  %3672 = vmatprep.subr.bf16.mxu0 %v3671_v44  ;;  %v3691_v37 = vpack.c.bf16 %v1735_v36, %v1734_v34  ;;  %v3695_v40 = vpack.c.bf16 %v1737_v39, %v1736_v38  ;;  %v2049_v34 = vld [vmem:[#allocation8 + $0x1f0] sm:$0xff]  ;;  %v2050_v36 = vld [vmem:[#allocation8 + $0x1f8] sm:$0xff] }
 0x323   : > { %3638 = vmatpush3.bf16.msra.mxu1 %v3635_v35  ;;  %3674 = vmatpush3.bf16.msra.mxu0 %v3671_v44  ;;  %v1739_v35 = vld [vmem:[#allocation7 + $0x358] sm:$0xff]  ;;  %v1741_v44 = vld [vmem:[#allocation7 + $0x368] sm:$0xff] }
 0x324   : > { %3640 = vmatprep.subr.bf16.mxu1 %v3639_v47  ;;  %3676 = vmatprep.subr.bf16.mxu0 %v3675_v50  ;;  %v3699_v42 = vpack.c.bf16 %v1739_v35, %v1738_v29  ;;  %v3703_v45 = vpack.c.bf16 %v1741_v44, %v1740_v43 }
 0x327   : > { %3642 = vmatpush3.bf16.msra.mxu1 %v3639_v47  ;;  %3678 = vmatpush3.bf16.msra.mxu0 %v3675_v50  ;;  %v1743_v47 = vld [vmem:[#allocation7 + $0x378] sm:$0xff]  ;;  %v1920_v50 = vld [vmem:[#allocation7 + $0x408] sm:$0xff] }
 0x328   : > { %3644 = vmatprep.subr.bf16.mxu1 %v3643_v54  ;;  %3680 = vmatprep.subr.bf16.mxu0 %v3679_v41  ;;  %v3707_v48 = vpack.c.bf16 %v1743_v47, %v1742_v46  ;;  %v3711_v51 = vpack.c.bf16 %v1920_v50, %v1919_v49 }
 0x32b   : > { %3646 = vmatpush3.bf16.msra.mxu1 %v3643_v54  ;;  %v1922_v54 = vld [vmem:[#allocation7 + $0x418] sm:$0xff] }
 0x32c   : > { %v3715_v55 = vpack.c.bf16 %v1922_v54, %v1921_v53 }
 0x3c4   : > { %v4759_v59 = vpop.f32.mrb[6].mxu0 }
 0x3c5   : > { %v4761_v61 = vpop.f32.mrb[7].mxu0 }
 0x3df   : > { %v1588_v3 = vpop.f32.mrb[12].mxu1 }
 0x3e0   : > { %v1605_v4 = vmax.f32 %v1588_v3, 0.0  ;;  %v3153_v5 = vpop.f32.mrb[13].mxu1 }
 0x3e1   : > { %v1926_v5 = vld [vmem:[#allocation7 + $0x438] sm:$0xff] }
 0x3e2   : > { %v1612_v6 = vrot.slane %v1605_v4, 6  ;;  %v1925_v4 = vld [vmem:[#allocation7 + $0x430] sm:$0xff] }
 0x3e3   : > { %v1593_v9 = vpop.f32.mrb[14].mxu1 }
 0x3e4   : > { %v1606_v10 = vmax.f32 %v1593_v9, 0.0  ;;  %v3156_v60 = vpop.f32.mrb[15].mxu1  ;;  %v1620_v62 = vsel %vm713_vm3, %v1612_v6, 0.0  ;;  %v1927_v9 = vld [vmem:[#allocation7 + $0x440] sm:$0xff] }
 0x3e5   : > { %v1643_v12 = vrot.slane %v1620_v62, 3  ;;  %v1836_v13 = vrot.slane %v1620_v62, 2  ;;  %v1936_v17 = vrot.slane %v1620_v62, 4  ;;  %v1929_v62 = vld [vmem:[#allocation7 + $0x450] sm:$0xff] }
 0x3e6   : > { %v1613_v11 = vrot.slane %v1606_v10, 6  ;;  %v1928_v10 = vld [vmem:[#allocation7 + $0x448] sm:$0xff] }
 0x3e7   : > { %v1598_v8 = vpop.f32.mrb[16].mxu1  ;;  %v3727_v60 = vpack.c.bf16 %v1928_v10, %v1927_v9 }
 0x3e8   : > { %v1614_v15 = vsel %vm1611_vm10, %v1612_v6, %v1613_v11  ;;  %v1607_v16 = vmax.f32 %v1598_v8, 0.0  ;;  %v3159_v0 = vpop.f32.mrb[17].mxu1  ;;  %v3723_v6 = vpack.c.bf16 %v1926_v5, %v1925_v4 }
 0x3e9   : > { %v1644_v14 = vrot.slane %v1614_v15, 3  ;;  %v1837_v52 = vrot.slane %v1614_v15, 2  ;;  %v1937_v18 = vrot.slane %v1614_v15, 4  ;;  %v1934_v0 = vld [vmem:[#allocation7 + $0x478] sm:$0xff] }
 0x3ea   : > { %v1615_v19 = vrot.slane %v1607_v16, 6  ;;  %v1933_v16 = vld [vmem:[#allocation7 + $0x470] sm:$0xff] }
 0x3eb   : > { %v1645_v20 = vsel %vm762_vm6, %v1643_v12, %v1644_v14  ;;  %v1838_v7 = vsel %vm618_vm2, %v1836_v13, %v1837_v52  ;;  %v1938_v28 = vsel %vm1935_vm11, %v1936_v17, %v1937_v18  ;;  %v1931_v12 = vld [vmem:[#allocation7 + $0x460] sm:$0xff]  ;;  %v1932_v13 = vld [vmem:[#allocation7 + $0x468] sm:$0xff]  ;;  %v3739_v17 = vpack.c.bf16 %v1934_v0, %v1933_v16 }
 0x3ec   : > { %v1616_v21 = vsel %vm1611_vm10, %v1613_v11, %v1615_v19  ;;  %3192 = vmatprep.mubr.f32.mxu1 %v1645_v20  ;;  %3227 = vmatprep.mubr.f32.mxu0 %v1645_v20  ;;  %v1930_v11 = vld [vmem:[#allocation7 + $0x458] sm:$0xff]  ;;  %v3735_v15 = vpack.c.bf16 %v1932_v13, %v1931_v12 }
 0x3ed   : > { %v1622_v63 = vsel %vm718_vm5, %v1616_v21, 0.0  ;;  %v3731_v8 = vpack.c.bf16 %v1930_v11, %v1929_v62  ;;  %v2038_v20 = vld [vmem:[#allocation8 + $0x198] sm:$0xff]  ;;  %v2040_v21 = vld [vmem:[#allocation8 + $0x1a8] sm:$0xff] }
 0x3ee   : > { %v1646_v22 = vrot.slane %v1622_v63, 3  ;;  %v1839_v23 = vrot.slane %v1622_v63, 2  ;;  %v1939_v24 = vrot.slane %v1622_v63, 4  ;;  %v2042_v63 = vld [vmem:[#allocation8 + $0x1b8] sm:$0xff] }
 0x3f0   : > { %v1647_v26 = vsel %vm762_vm6, %v1644_v14, %v1646_v22  ;;  %v1840_v27 = vsel %vm618_vm2, %v1837_v52, %v1839_v23  ;;  %v4775_v32 = vsel %vm1935_vm11, %v1937_v18, %v1939_v24  ;;  %v2035_v14 = vld [vmem:[#allocation8 + $0x180] sm:$0xff]  ;;  %v2036_v52 = vld [vmem:[#allocation8 + $0x188] sm:$0xff]  ;;  %v2037_v18 = vld [vmem:[#allocation8 + $0x190] sm:$0xff]  ;;  %v3755_v22 = vpack.c.bf16 %v2042_v63, %v2041_v56 }
 0x3f1   : > { %3193 = vmatmul.mubr.f32.vlgmr.msra.gmra.mrb[18].mxu1 %v1647_v26  ;;  %3228 = vmatmul.mubr.f32.vlgmr.msra.gmra.mrb[8].mxu0 %v1647_v26  ;;  %v3743_v19 = vpack.c.bf16 %v2036_v52, %v2035_v14  ;;  %v2043_v23 = vld [vmem:[#allocation8 + $0x1c0] sm:$0xff]  ;;  %v2044_v24 = vld [vmem:[#allocation8 + $0x1c8] sm:$0xff]  ;;  %v2045_v26 = vld [vmem:[#allocation8 + $0x1d0] sm:$0xff] }
 0x3f2   : > { %3682 = vmatpush3.bf16.msra.mxu0 %v3679_v41  ;;  %3262 = vmatprep.mubr.f32.mxu0 %v1838_v7  ;;  %v1924_v41 = vld [vmem:[#allocation7 + $0x428] sm:$0xff]  ;;  %v3747_v7 = vpack.c.bf16 %v2038_v20, %v2037_v18  ;;  %v3763_v31 = vpack.c.bf16 %v2046_v30, %v2045_v26 }
 0x3f3   : > { %3684 = vmatprep.subr.bf16.mxu0 %v3683_v25  ;;  %v3719_v3 = vpack.c.bf16 %v1924_v41, %v1923_v58 }
 0x3f6   : > { %3686 = vmatpush3.bf16.msra.mxu0 %v3683_v25  ;;  %v3759_v25 = vpack.c.bf16 %v2044_v24, %v2043_v23 }
 0x3f7   : > { %3688 = vmatprep.subr.bf16.mxu0 %v3687_v33 }
 0x3fa   : > { %3690 = vmatpush3.bf16.msra.mxu0 %v3687_v33 }
 0x3fb   : > { %3692 = vmatprep.subr.bf16.mxu0 %v3691_v37 }
 0x3fe   : > { %3694 = vmatpush3.bf16.msra.mxu0 %v3691_v37  ;;  %v3771_v37 = vpack.c.bf16 %v2050_v36, %v2049_v34 }
 0x3ff   : > { %3696 = vmatprep.subr.bf16.mxu0 %v3695_v40 }
 0x402   : > { %3698 = vmatpush3.bf16.msra.mxu0 %v3695_v40 }
 0x403   : > { %3700 = vmatprep.subr.bf16.mxu0 %v3699_v42 }
 0x406   : > { %3702 = vmatpush3.bf16.msra.mxu0 %v3699_v42 }
 0x407   : > { %3704 = vmatprep.subr.bf16.mxu0 %v3703_v45 }
 0x40a   : > { %3706 = vmatpush3.bf16.msra.mxu0 %v3703_v45 }
 0x40b   : > { %3708 = vmatprep.subr.bf16.mxu0 %v3707_v48 }
 0x40e   : > { %3710 = vmatpush3.bf16.msra.mxu0 %v3707_v48 }
 0x40f   : > { %3712 = vmatprep.subr.bf16.mxu0 %v3711_v51 }
 0x411   : > { %3263 = vmatmul.mubr.f32.vlgmr.msra.gmra.mrb[8].mxu0 %v1840_v27  ;;  %v2047_v27 = vld [vmem:[#allocation8 + $0x1e0] sm:$0xff] }
 0x412   : > { %3714 = vmatpush3.bf16.msra.mxu0 %v3711_v51  ;;  %3297 = vmatprep.mubr.f32.mxu0 %v1938_v28  ;;  %v2039_v28 = vld [vmem:[#allocation8 + $0x1a0] sm:$0xff] }
 0x413   : > { %3716 = vmatprep.subr.bf16.mxu0 %v3715_v55  ;;  %v3751_v1 = vpack.c.bf16 %v2040_v21, %v2039_v28 }
 0x416   : > { %3718 = vmatpush3.bf16.msra.mxu0 %v3715_v55 }
 0x417   : > { %3720 = vmatprep.subr.bf16.mxu0 %v3719_v3 }
 0x41a   : > { %3722 = vmatpush3.bf16.msra.mxu0 %v3719_v3 }
 0x41b   : > { %3724 = vmatprep.subr.bf16.mxu0 %v3723_v6 }
 0x41e   : > { %3726 = vmatpush3.bf16.msra.mxu0 %v3723_v6 }
 0x41f   : > { %3728 = vmatprep.subr.bf16.mxu0 %v3727_v60 }
 0x422   : > { %3730 = vmatpush3.bf16.msra.mxu0 %v3727_v60 }
 0x423   : > { %3732 = vmatprep.subr.bf16.mxu0 %v3731_v8 }
 0x426   : > { %3734 = vmatpush3.bf16.msra.mxu0 %v3731_v8 }
 0x427   : > { %3736 = vmatprep.subr.bf16.mxu0 %v3735_v15 }
 0x42a   : > { %3738 = vmatpush3.bf16.msra.mxu0 %v3735_v15 }
 0x42b   : > { %3740 = vmatprep.subr.bf16.mxu0 %v3739_v17 }
 0x42e   : > { %3742 = vmatpush3.bf16.msra.mxu0 %v3739_v17 }
 0x42f   : > { %3744 = vmatprep.subr.bf16.mxu0 %v3743_v19 }
 0x431   : > { %3298 = vmatmul.mubr.f32.vlgmr.msra.gmra.mrb[8].mxu0 %v4775_v32  ;;  %v2048_v32 = vld [vmem:[#allocation8 + $0x1e8] sm:$0xff] }
 0x432   : > { %3746 = vmatpush3.bf16.msra.mxu0 %v3743_v19  ;;  %v3767_v33 = vpack.c.bf16 %v2048_v32, %v2047_v27 }
 0x433   : > { %3748 = vmatprep.subr.bf16.mxu0 %v3747_v7 }
 0x436   : > { %3750 = vmatpush3.bf16.msra.mxu0 %v3747_v7 }
 0x437   : > { %3752 = vmatprep.subr.bf16.mxu0 %v3751_v1 }
 0x43a   : > { %3754 = vmatpush3.bf16.msra.mxu0 %v3751_v1 }
 0x43b   : > { %3756 = vmatprep.subr.bf16.mxu0 %v3755_v22 }
 0x43e   : > { %3758 = vmatpush3.bf16.msra.mxu0 %v3755_v22 }
 0x43f   : > { %3760 = vmatprep.subr.bf16.mxu0 %v3759_v25 }
 0x442   : > { %3762 = vmatpush3.bf16.msra.mxu0 %v3759_v25 }
 0x443   : > { %3764 = vmatprep.subr.bf16.mxu0 %v3763_v31 }
 0x446   : > { %3766 = vmatpush3.bf16.msra.mxu0 %v3763_v31 }
 0x447   : > { %3768 = vmatprep.subr.bf16.mxu0 %v3767_v33 }
 0x44a   : > { %3770 = vmatpush3.bf16.msra.mxu0 %v3767_v33 }
 0x44b   : > { %3772 = vmatprep.subr.bf16.mxu0 %v3771_v37 }
 0x44e   : > { %3774 = vmatpush3.bf16.msra.mxu0 %v3771_v37 }
 0x4c4   : > { %v3194_v38 = vpop.f32.mrb[18].mxu1 }
 0x4c5   : > { %v4779_v39 = vadd.f32 %v3194_v38, %v4759_v59  ;;  %v1716_v40 = vpop.f32.mrb[19].mxu1 }
 0x4c6   : > { %v4782_v29 = vadd.f32 %v1716_v40, %v4761_v61 }
 0x504   : > { %v3299_v35 = vpop.f32.mrb[8].mxu0 }
 0x505   : > { %v2021_v42 = vmax.f32 %v3299_v35, 0.0  ;;  %v2009_v43 = vpop.f32.mrb[9].mxu0 }
 0x506   : > { %v2020_v44 = vmax.f32 %v2009_v43, 0.0 }
 0x507   : > { %v2026_v45 = vrot.slane %v2021_v42, 5 }
 0x508   : > { %v2025_v46 = vrot.slane %v2020_v44, 5 }
 0x509   : > { %v2033_v59 = vsel %vm718_vm5, %v2026_v45, 0.0 }
 0x50a   : > { %v2057_v47 = vrot.slane %v2033_v59, 3  ;;  %v2027_v48 = vsel %vm2024_vm12, %v2025_v46, %v2026_v45  ;;  %v2031_v61 = vsel %vm713_vm3, %v2025_v46, 0.0 }
 0x50b   : > { %v2054_v49 = vrot.slane %v2031_v61, 3  ;;  %v2055_v50 = vrot.slane %v2027_v48, 3 }
 0x50d   : > { %v2056_v51 = vsel %vm762_vm6, %v2054_v49, %v2055_v50  ;;  %v2058_v53 = vsel %vm762_vm6, %v2055_v50, %v2057_v47 }
 0x50e   : > { %3332 = vmatprep.mubr.f32.mxu0 %v2056_v51 }
 0x50f   : > { %3333 = vmatmul.mubr.f32.vlgmr.msra.gmra.mrb[10].mxu0 %v2058_v53 }
 0x510   : > { %4060 = shalt.err (!%p4057_p8)
}
 0x511   : > { %s4061_s5 = scalar_lea.hbm %s4801_s17, 256  ;;  %s4065_s12 = scalar_lea.hbm %s4929_s6, 512 }
 0x512   : > { %p4062_p12 = scmp.ne.s32.totalorder %s4801_s17, %s4061_s5  ;;  %p4066_p13 = scmp.lt.u32.totalorder %s4801_s17, %s4929_s6 }
 0x513   : > { %p4067_p6 = scmp.lt.u32.totalorder %s4065_s12, %s4061_s5  ;;  %p4069_p5 = scmp.lt.u32.totalorder %s4061_s5, %s4801_s17 }
 0x514   : > { %p4063_p1 = pnand %p4062_p12, %p4411_p10 }
 0x515   : > { %p4068_p3 = por %p4067_p6, %p4066_p13 }
 0x516   : > { %p4064_p11 = pneg %p4063_p1 }
 0x517   : > { %p4070_p7 = por %p4069_p5, %p4068_p3 }
 0x519   : > { %p4071_p9 = pnand %p4070_p7, %p4064_p11 }
 0x51b   : > { %4074 = shalt.err (!%p4071_p9)
}
 0x51c   : > { %s4941_s8 = smov 128   ;;  %s4210_s23 = smov 8  }
 0x51d   : > { %3838 = dma.vmem_to_hbm [thread:$0]  (%p4411_p10), %s4793_s10, 256, %s4801_s17, %s4803_s19, %s4941_s8, %s4941_s8, %s4210_s23  }
 0x51e   : > { %s2419_s5 = sshll.u32 %s4189_s27, 7  ;;  %s4075_s30 = scalar_lea.vmem %s4832_s21, 128 }
 0x51f   : > { %s2211_s12 = scalar_lea.hbm %s4930_s7, %s2419_s5  ;;  %p4076_p0 = scmp.ne.s32.totalorder %s4832_s21, %s4075_s30 }
 0x520   : > { %s4211_s11 = smov [#allocation13]  }
 0x521   : > { %p4077_p2 = pnand %p4076_p0, %p4411_p10  ;;  %s4079_s16 = sshll.u32 %s4211_s11, 4  ;;  %s4080_s16 = int_to_ptr.vmem [resolvable:$false] %s4079_s16 }
 0x522   : > { %s4081_s10 = scalar_lea.vmem %s4080_s16, 256  ;;  %p4082_p8 = scmp.lt.s32.totalorder %s4832_s21, %s4080_s16 }
 0x523   : > { %p4078_p4 = pneg %p4077_p2  ;;  %p4083_p12 = scmp.lt.s32.totalorder %s4081_s10, %s4075_s30 }
 0x525   : > { %p4084_p1 = por %p4083_p12, %p4082_p8 }
 0x527   : > { %p4085_p11 = pnand %p4084_p1, %p4078_p4 }
 0x529   : > { %4088 = shalt.err (!%p4085_p11)
}
 0x52a   : > { %s4089_s13 = scalar_lea.hbm %s2211_s12, 128  ;;  %s4093_s18 = scalar_lea.hbm %s4930_s7, 256 }
 0x52b   : > { %p4090_p13 = scmp.ne.s32.totalorder %s2211_s12, %s4089_s13  ;;  %p4094_p5 = scmp.lt.u32.totalorder %s2211_s12, %s4930_s7 }
 0x52c   : > { %p4095_p7 = scmp.lt.u32.totalorder %s4093_s18, %s4089_s13  ;;  %p4097_p0 = scmp.lt.u32.totalorder %s4089_s13, %s2211_s12 }
 0x52d   : > { %p4091_p6 = pnand %p4090_p13, %p4411_p10 }
 0x52e   : > { %p4096_p9 = por %p4095_p7, %p4094_p5 }
 0x52f   : > { %p4092_p3 = pneg %p4091_p6 }
 0x530   : > { %p4098_p2 = por %p4097_p0, %p4096_p9 }
 0x532   : > { %p4099_p4 = pnand %p4098_p2, %p4092_p3 }
 0x534   : > { %4102 = shalt.err (!%p4099_p4)
}
 0x535   : > { %3839 = dma.vmem_to_hbm [thread:$0]  (%p4411_p10), %s4832_s21, 128, %s2211_s12, %s4803_s19   ;;  %v2411_v2 = vld [vmem:[%s4927_s4] ss:$0 sm:$0xff] }
 0x536   : > { %s366_s8 = scalar_lea.vmem [#allocation10], %s2403_s9  ;;  %s4961_s21 = sshll.u32 %s4189_s27, 8 }
 0x537   : > { %s2178_s11 = sshll.u32 %s366_s8, 4  ;;  %s4962_s10 = sld [smem:[#allocation21_spill]]  ;;  %s4862_s11 = int_to_ptr.vmem [resolvable:$true] %s2178_s11 }
 0x538   : > { %s2153_s9 = scalar_lea.sflag [#allocation4], %s4470_s22  ;;  %s4103_s17 = scalar_lea.vmem %s4862_s11, 256 }
 0x539   : > { %p4104_p8 = scmp.ne.s32.totalorder %s4862_s11, %s4103_s17  ;;  %s4212_s5 = smov [#allocation10]  }
 0x53a   : > { %s4107_s18 = sshll.u32 %s4212_s5, 4  ;;  %s4108_s18 = int_to_ptr.vmem [resolvable:$false] %s4107_s18 }
 0x53b   : > { %p4105_p12 = pnand %p4104_p8, %p4411_p10  ;;  %s4109_s20 = scalar_lea.vmem %s4108_s18, 512 }
 0x53c   : > { %p4110_p11 = scmp.lt.s32.totalorder %s4862_s11, %s4108_s18  ;;  %p4111_p13 = scmp.lt.s32.totalorder %s4109_s20, %s4103_s17 }
 0x53d   : > { %s4869_s13 = scalar_lea.hbm %s4962_s10, %s4961_s21  ;;  %p4106_p1 = pneg %p4105_p12 }
 0x53e   : > { %p4112_p6 = por %p4111_p13, %p4110_p11 }
 0x540   : > { %p4113_p3 = pnand %p4112_p6, %p4106_p1 }
 0x5e2   : > { %v3334_v57 = vpop.f32.mrb[10].mxu0 }
 0x5e3   : > { %v3779_v54 = vadd.f32 %v4779_v39, %v3334_v57  ;;  %v2127_v55 = vpop.f32.mrb[11].mxu0 }
 0x5e4   : > { %v3781_v58 = vadd.f32 %v4782_v29, %v2127_v55 }
 0x5e5   : > { %v2146_v41 = vadd.f32 %v3779_v54, %v2411_v2 }
 0x5e6   : > { %v2145_v3 = vadd.f32 %v3781_v58, %v2411_v2 }
 0x5e7   : > { %2148 = vst [vmem:[%s366_s8 + $0x8] sm:$0xff] %v2146_v41 }
 0x5e8   : > { %2147 = vst [vmem:[%s366_s8] sm:$0xff] %v2145_v3 }
 0x5e9   : > { %4116 = shalt.err (!%p4113_p3)
}
 0x5ea   : > { %s4117_s27 = scalar_lea.hbm %s4869_s13, 256  ;;  %s4121_s8 = scalar_lea.hbm %s4962_s10, 512 }
 0x5eb   : > { %p4118_p5 = scmp.ne.s32.totalorder %s4869_s13, %s4117_s27  ;;  %p4122_p0 = scmp.lt.u32.totalorder %s4869_s13, %s4962_s10 }
 0x5ec   : > { %p4123_p2 = scmp.lt.u32.totalorder %s4121_s8, %s4117_s27  ;;  %p4125_p8 = scmp.lt.u32.totalorder %s4117_s27, %s4869_s13 }
 0x5ed   : > { %p4119_p7 = pnand %p4118_p5, %p4411_p10 }
 0x5ee   : > { %p4124_p4 = por %p4123_p2, %p4122_p0 }
 0x5ef   : > { %p4120_p9 = pneg %p4119_p7 }
 0x5f0   : > { %p4126_p12 = por %p4125_p8, %p4124_p4 }
 0x5f2   : > { %p4127_p1 = pnand %p4126_p12, %p4120_p9 }
 0x5f4   : > { %4130 = shalt.err (!%p4127_p1)
}
 0x5f5   : > { %s4963_s12 = smov 128  }
 0x5f6   : > { %3837 = dma.vmem_to_hbm [thread:$0]  (%p4411_p10), %s4862_s11, 256, %s4869_s13, %s2153_s9, %s4963_s12, %s4963_s12, %s4210_s23  }
 0x5f7 PF: > { %s4964_s17 = sld [smem:[#allocation19_spill]]  ;;  %s4965_s5 = sld [smem:[#allocation20_spill]] }
 0x5f8   : > { %p4967_p13 = scmp.ge.s32.totalorder %s4197_s29, 2 }
 0x5fd   : > { %s2225_s18 = sand.u32 1, %s4964_s17   ;;  %p4966_p11 = scmp.ne.s32.totalorder %s4965_s5, 0 }
 0x5fe   : > { %s2226_s20 = scalar_lea.sflag [#allocation4], %s2225_s18 }
 0x5ff   : > { %p3858_p6 = pnand %p4967_p13, %p4966_p11 }
 0x601   : > { %4168 = dma.done.wait (!%p3858_p6), %s2226_s20, 256  }
 0x602   : > { %4170 = vsyncadd (!%p3858_p6), %s2226_s20, 4294967040  ;;  %s4968_s24 = sadd.s32 4294967294, %s4197_s29  }
 0x603   : > { %s2234_s27 = sand.u32 1, %s4968_s24  }
 0x604   : > { %s2235_s16 = scalar_lea.sflag [#allocation12], %s2234_s27 }
 0x605   : > { %4172 = dma.done.wait (!%p3858_p6), %s2235_s16, 384  }
 0x606   : > { %4174 = vsyncadd (!%p3858_p6), %s2235_s16, 4294966912  ;;  %s29_s29 = sadd.s32 1, %s4197_s29   ;;  %s4969_s24 = smov %s4181_s25 }
 0x607   : > { %p26_p10 = scmp.ge.s32.totalorder %s29_s29, 4   ;;  %s4970_s25 = smov %s4185_s26 }
 0x608   : > { %s4971_s26 = smov %s4427_s15  ;;  %s4972_s27 = smov %s4193_s28 }
 0x609   : > { %s4973_s28 = smov %s4975_s14  ;;  %28 = sbr.rel (!%p26_p10) target bundleno = 12 (0xc), region = 142 }
 0x610   :  { %2249 = vsyncpa [#allocation3], 1 }
 0x611   :  { %2251 = vsyncpa [#allocation3 + $0x1], 1 }
 0x612   :  { %2252 = vsyncpa [#allocation6], 1 }
 0x613   :  { %2253 = vsyncpa [#allocation9], 1 }
 0x614   :  { %2254 = vsyncpa [#allocation4], 1 }
 0x615   :  { %2256 = vsyncpa [#allocation4 + $0x1], 1 }
 0x616   :  { %2257 = vsyncpa [#allocation12], 1 }
 0x617   :  { %2259 = vsyncpa [#allocation12 + $0x1], 1 }

</bundles_post_ra>
